<compile_context>
chip_gen: v7x
topology: tpu7x:2x2x1
jax: 0.10.0
libtpu: 0.0.40
codegen_flags: <defaults>
</compile_context>

<pallas_src>
import functools

import jax
import jax.numpy as jnp
from jax import lax
from jax.experimental import pallas as pl
from jax.experimental.pallas import tpu as pltpu

_PAD_BOT = 8  # bottom guard rows of the padded squeeze scratch


def _pad_top(W):
    # Choose pad so (pad + W) % 8 == 0 and pad >= 1: the interior store and the
    # centre-tap read are sublane-aligned, and the kh=0, dx=-1 slice (start =
    # pad - 1) stays in bounds / inside the zeroed guard band.
    return 8 - (W % 8) if (W % 8) else 8


# ------------------------------ Pallas kernel ------------------------------ #

def _fire_kernel(x_ref, wsq_ref, bsq_ref, w1_ref, b1_ref, w3_ref, b3_ref,
                 o_ref, spad_ref, *, H, W, pad_top):
    # x_ref   : (1, HW, Cin)  bf16   channels-last, spatially flattened input
    # wsq_ref : (Cin, Sq)     bf16   folded squeeze weight
    # bsq_ref : (1, Sq)       f32    folded squeeze bias
    # w1_ref  : (Sq, E)       bf16   folded expand1x1 weight
    # b1_ref  : (1, E)        f32
    # w3_ref  : (9*Sq, E)     bf16   folded expand3x3 weight (taps stacked on K)
    # b3_ref  : (1, E)        f32
    # o_ref   : (1, HW, 2*E)  bf16   relu(concat([expand1x1, expand3x3]))
    # spad_ref: (pad_top + (H+2)*W + _PAD_BOT, Sq) f32 vertically padded scratch
    HW = H * W
    Sq = wsq_ref.shape[1]

    # squeeze: 1x1 conv (+ folded BN) + ReLU.  bf16 MXU inputs, f32 accumulate.
    s = jnp.dot(x_ref[0], wsq_ref[...], preferred_element_type=jnp.float32)
    s = jnp.maximum(s + bsq_ref[...], 0.0)

    # Zero only the guard rows (one image row + alignment pad above, one image
    # row + pad below); the interior rows are fully overwritten every step.
    spad_ref[pl.ds(0, pad_top + W), :] = jnp.zeros((pad_top + W, Sq), jnp.float32)
    spad_ref[pl.ds(pad_top + W + HW, W + _PAD_BOT), :] = jnp.zeros(
        (W + _PAD_BOT, Sq), jnp.float32)
    spad_ref[pl.ds(pad_top + W, HW), :] = s

    # expand1x1 branch straight off the squeeze activation (no zero-padded
    # columns riding in the 3x3 block matmul).
    out1 = jnp.dot(s.astype(jnp.bfloat16), w1_ref[...],
                   preferred_element_type=jnp.float32)

    # expand3x3: nine shifted sublane slices of the padded scratch.  Horizontal
    # borders masked with (HW, 1) column predicates (f32 where, then cast),
    # concatenated on the lane axis in bf16, one lane-dense MXU matmul.
    col = lax.broadcasted_iota(jnp.int32, (HW, 1), 0) % W
    left = col == 0
    right = col == W - 1

    taps = []
    for kh in range(3):
        for kw in range(3):
            dx = kw - 1
            t = spad_ref[pl.ds(pad_top + kh * W + dx, HW), :]
            if dx == -1:
                t = jnp.where(left, 0.0, t)       # left border -> 0
            elif dx == 1:
                t = jnp.where(right, 0.0, t)      # right border -> 0
            taps.append(t.astype(jnp.bfloat16))
    big = jnp.concatenate(taps, axis=-1)          # (HW, 9*Sq) bf16

    out3 = jnp.dot(big, w3_ref[...], preferred_element_type=jnp.float32)

    # bias + ReLU in f32, cast per-branch, single (HW, 2*E) bf16 store.
    y1 = jnp.maximum(out1 + b1_ref[...], 0.0).astype(o_ref.dtype)
    y3 = jnp.maximum(out3 + b3_ref[...], 0.0).astype(o_ref.dtype)
    o_ref[0] = jnp.concatenate([y1, y3], axis=-1)


def _fire_call(x_flat, p, H, W):
    N, HW, Cin = x_flat.shape
    Sq = p["wsq"].shape[1]
    E = p["w1"].shape[1]
    pad_top = _pad_top(W)
    kernel = functools.partial(_fire_kernel, H=H, W=W, pad_top=pad_top)
    return pl.pallas_call(
        kernel,
        out_shape=jax.ShapeDtypeStruct((N, HW, 2 * E), jnp.bfloat16),
        grid=(N,),
        in_specs=[
            pl.BlockSpec((1, HW, Cin), lambda n: (n, 0, 0)),
            pl.BlockSpec((Cin, Sq), lambda n: (0, 0)),
            pl.BlockSpec((1, Sq), lambda n: (0, 0)),
            pl.BlockSpec((Sq, E), lambda n: (0, 0)),
            pl.BlockSpec((1, E), lambda n: (0, 0)),
            pl.BlockSpec((9 * Sq, E), lambda n: (0, 0)),
            pl.BlockSpec((1, E), lambda n: (0, 0)),
        ],
        out_specs=pl.BlockSpec((1, HW, 2 * E), lambda n: (n, 0, 0)),
        scratch_shapes=[
            pltpu.VMEM((pad_top + (H + 2) * W + _PAD_BOT, Sq), jnp.float32)],
        compiler_params=pltpu.CompilerParams(dimension_semantics=("parallel",)),
    )(x_flat, p["wsq"], p["bsq"], p["w1"], p["b1"], p["w3"], p["b3"])


# ------------------------------- Parameters -------------------------------- #

def _bn_params(key, c):
    k1, k2, k3, k4 = jax.random.split(key, 4)
    gamma = 1.0 + 0.1 * jax.random.normal(k1, (c,), jnp.float32)
    beta = 0.1 * jax.random.normal(k2, (c,), jnp.float32)
    mean = 0.1 * jax.random.normal(k3, (c,), jnp.float32)
    var = 1.0 + 0.2 * jax.random.uniform(k4, (c,), jnp.float32)
    return (gamma, beta, mean, var)


def init_fire_params(key, inplanes, squeeze_planes, expand_planes):
    ks = jax.random.split(key, 9)
    return {
        "w_sq": 0.2 * jax.random.normal(ks[0], (squeeze_planes, inplanes, 1, 1), jnp.float32),
        "b_sq": 0.1 * jax.random.normal(ks[1], (squeeze_planes,), jnp.float32),
        "bn_sq": _bn_params(ks[2], squeeze_planes),
        "w_e1": 0.2 * jax.random.normal(ks[3], (expand_planes, squeeze_planes, 1, 1), jnp.float32),
        "b_e1": 0.1 * jax.random.normal(ks[4], (expand_planes,), jnp.float32),
        "bn_e1": _bn_params(ks[5], expand_planes),
        "w_e3": 0.2 * jax.random.normal(ks[6], (expand_planes, squeeze_planes, 3, 3), jnp.float32),
        "b_e3": 0.1 * jax.random.normal(ks[7], (expand_planes,), jnp.float32),
        "bn_e3": _bn_params(ks[8], expand_planes),
    }


def _fold_bn(w_mat, b, gamma, beta, mean, var, eps=1e-5):
    # w_mat has the output channel on its LAST axis (matmul form).
    scale = gamma / jnp.sqrt(var + eps)
    return w_mat * scale, (b - mean) * scale + beta


def prepare_fire_weights(params):
    """Fold BN into conv weights and lay them out for the kernel.

    Call once at model-load time (outside the jitted forward) so chained Fire
    modules don't redo the fold / transposes / casts every call.
    """
    Sq, Cin = params["w_sq"].shape[:2]
    E = params["w_e1"].shape[0]

    wsq, bsq = _fold_bn(params["w_sq"].reshape(Sq, Cin).T, params["b_sq"], *params["bn_sq"])
    w1, b1 = _fold_bn(params["w_e1"].reshape(E, Sq).T, params["b_e1"], *params["bn_e1"])
    w3_4d = jnp.transpose(params["w_e3"], (2, 3, 1, 0)).reshape(9, Sq, E)  # k = kh*3 + kw
    w3, b3 = _fold_bn(w3_4d, params["b_e3"], *params["bn_e3"])

    return {
        "wsq": wsq.astype(jnp.bfloat16),
        "bsq": bsq.reshape(1, Sq).astype(jnp.float32),
        "w1": w1.astype(jnp.bfloat16),
        "b1": b1.reshape(1, E).astype(jnp.float32),
        "w3": w3.reshape(9 * Sq, E).astype(jnp.bfloat16),
        "b3": b3.reshape(1, E).astype(jnp.float32),
    }


# ------------------------------ Fire forward ------------------------------- #

def fire_forward_nhwc(x_nhwc, prepared):
    """Channels-last Fire forward: (N, H, W, Cin) -> (N, H, W, 2*E), bf16."""
    N, H, W, Cin = x_nhwc.shape
    x_flat = x_nhwc.reshape(N, H * W, Cin).astype(jnp.bfloat16)
    out = _fire_call(x_flat, prepared, H, W)
    return out.reshape(N, H, W, out.shape[-1])


def fire_forward(x_nchw, prepared):
    """PyTorch-compatible NCHW wrapper (layout flips only at the edges)."""
    x_nhwc = jnp.transpose(x_nchw, (0, 2, 3, 1))
    out = fire_forward_nhwc(x_nhwc, prepared)
    return jnp.transpose(out, (0, 3, 1, 2))


# ------------------------------ JAX reference ------------------------------ #

def fire_reference(x, p, eps=1e-5):
    def bn(y, gamma, beta, mean, var):
        scale = (gamma / jnp.sqrt(var + eps)).reshape(1, -1, 1, 1)
        return (y - mean.reshape(1, -1, 1, 1)) * scale + beta.reshape(1, -1, 1, 1)

    def conv(x, w, b, pad):
        y = lax.conv_general_dilated(
            x, w, (1, 1), [(pad, pad), (pad, pad)],
            dimension_numbers=("NCHW", "OIHW", "NCHW"))
        return y + b.reshape(1, -1, 1, 1)

    s = jax.nn.relu(bn(conv(x, p["w_sq"], p["b_sq"], 0), *p["bn_sq"]))
    e1 = bn(conv(s, p["w_e1"], p["b_e1"], 0), *p["bn_e1"])
    e2 = bn(conv(s, p["w_e3"], p["b_e3"], 1), *p["bn_e3"])
    return jax.nn.relu(jnp.concatenate([e1, e2], axis=1))


# ----------------------------------- Main ----------------------------------- #

if __name__ == "__main__":
    key = jax.random.PRNGKey(0)
    k_x, k_p = jax.random.split(key)

    N, Cin, H, W = 2, 4, 16, 16
    squeeze_planes, expand_planes = 8, 16

    x = jax.random.normal(k_x, (N, Cin, H, W), jnp.float32)
    params = init_fire_params(k_p, Cin, squeeze_planes, expand_planes)

    # BN fold / weight layout happens once, outside the jitted forward.
    prepared = prepare_fire_weights(params)

    fire = jax.jit(lambda inp: fire_forward(inp, prepared))
    out = jax.block_until_ready(fire(x))

    assert out.shape == (N, 2 * expand_planes, H, W), out.shape
    ref = fire_reference(x, params)
    out_f32 = out.astype(jnp.float32)
    max_err = float(jnp.max(jnp.abs(out_f32 - ref)))
    # bf16 MXU inputs + bf16 output with f32 accumulation -> looser tolerance.
    assert jnp.allclose(out_f32, ref, atol=5e-2, rtol=5e-2), max_err

    print("KERNEL_OK")
</pallas_src>

<mosaic_0001>
module attributes {stable_mosaic.version = 11 : i64} {
  func.func @_fire_kernel(%arg0: i32, %arg1: memref<1x256x4xbf16, #tpu.memory_space<vmem>>, %arg2: memref<4x8xbf16, #tpu.memory_space<vmem>>, %arg3: memref<1x8xf32, #tpu.memory_space<vmem>>, %arg4: memref<8x16xbf16, #tpu.memory_space<vmem>>, %arg5: memref<1x16xf32, #tpu.memory_space<vmem>>, %arg6: memref<72x16xbf16, #tpu.memory_space<vmem>>, %arg7: memref<1x16xf32, #tpu.memory_space<vmem>>, %arg8: memref<1x256x32xbf16, #tpu.memory_space<vmem>>, %arg9: memref<304x8xf32, #tpu.memory_space<vmem>>) attributes {dimension_semantics = [#tpu.dimension_semantics<parallel>], iteration_bounds = array<i64: 2>, scalar_prefetch = 0 : i64, scratch_operands = 1 : i64, tpu.core_type = #tpu.core_type<tc>, window_params = [{transform_indices = @transform_0, window_bounds = array<i64: 1, 256, 4>}, {pipeline_mode = #tpu.pipeline_mode<synchronous>, transform_indices = @transform_1, window_bounds = array<i64: 4, 8>}, {pipeline_mode = #tpu.pipeline_mode<synchronous>, transform_indices = @transform_2, window_bounds = array<i64: 1, 8>}, {pipeline_mode = #tpu.pipeline_mode<synchronous>, transform_indices = @transform_3, window_bounds = array<i64: 8, 16>}, {pipeline_mode = #tpu.pipeline_mode<synchronous>, transform_indices = @transform_4, window_bounds = array<i64: 1, 16>}, {pipeline_mode = #tpu.pipeline_mode<synchronous>, transform_indices = @transform_5, window_bounds = array<i64: 72, 16>}, {pipeline_mode = #tpu.pipeline_mode<synchronous>, transform_indices = @transform_6, window_bounds = array<i64: 1, 16>}, {transform_indices = @transform_7, window_bounds = array<i64: 1, 256, 32>}]} {
    %c0 = arith.constant 0 : index
    %c0_0 = arith.constant 0 : index
    %c0_1 = arith.constant 0 : index
    %0 = vector.load %arg1[%c0, %c0_0, %c0_1] : memref<1x256x4xbf16, #tpu.memory_space<vmem>>, vector<1x256x4xbf16>
    %1 = vector.shape_cast %0 : vector<1x256x4xbf16> to vector<256x4xbf16>
    %c0_2 = arith.constant 0 : index
    %c0_3 = arith.constant 0 : index
    %2 = vector.load %arg2[%c0_2, %c0_3] : memref<4x8xbf16, #tpu.memory_space<vmem>>, vector<4x8xbf16>
    %cst = arith.constant dense<0.000000e+00> : vector<256x8xf32>
    %3 = tpu.matmul %1, %2, %cst {dimension_numbers = #tpu.dot_dimension_numbers<[1], [0], [0], [1], [0, 0, 1, 1], [], []>} : vector<256x4xbf16>, vector<4x8xbf16>, vector<256x8xf32> -> vector<256x8xf32>
    %c0_4 = arith.constant 0 : index
    %c0_5 = arith.constant 0 : index
    %4 = vector.load %arg3[%c0_4, %c0_5] : memref<1x8xf32, #tpu.memory_space<vmem>>, vector<1x8xf32>
    %5 = vector.broadcast %4 : vector<1x8xf32> to vector<256x8xf32>
    %6 = arith.addf %3, %5 : vector<256x8xf32>
    %cst_6 = arith.constant 0.000000e+00 : f32
    %7 = vector.broadcast %cst_6 : f32 to vector<256x8xf32>
    %8 = arith.maximumf %6, %7 : vector<256x8xf32>
    %cst_7 = arith.constant 0.000000e+00 : f32
    %9 = vector.broadcast %cst_7 : f32 to vector<24x8xf32>
    %c0_8 = arith.constant 0 : index
    %c0_9 = arith.constant 0 : index
    %10 = vector.load %arg9[%c0_8, %c0_9] : memref<304x8xf32, #tpu.memory_space<vmem>>, vector<24x8xf32>
    tpu.vector_store %arg9[%c0_8, %c0_9], %9 {strides = array<i32>} : memref<304x8xf32, #tpu.memory_space<vmem>>, vector<24x8xf32>,
    %cst_10 = arith.constant 0.000000e+00 : f32
    %11 = vector.broadcast %cst_10 : f32 to vector<24x8xf32>
    %c280 = arith.constant 280 : index
    %c0_11 = arith.constant 0 : index
    %12 = vector.load %arg9[%c280, %c0_11] : memref<304x8xf32, #tpu.memory_space<vmem>>, vector<24x8xf32>
    tpu.vector_store %arg9[%c280, %c0_11], %11 {strides = array<i32>} : memref<304x8xf32, #tpu.memory_space<vmem>>, vector<24x8xf32>,
    %c24 = arith.constant 24 : index
    %c0_12 = arith.constant 0 : index
    %13 = vector.load %arg9[%c24, %c0_12] : memref<304x8xf32, #tpu.memory_space<vmem>>, vector<256x8xf32>
    tpu.vector_store %arg9[%c24, %c0_12], %8 {strides = array<i32>} : memref<304x8xf32, #tpu.memory_space<vmem>>, vector<256x8xf32>,
    %14 = arith.truncf %8 : vector<256x8xf32> to vector<256x8xbf16>
    %c0_13 = arith.constant 0 : index
    %c0_14 = arith.constant 0 : index
    %15 = vector.load %arg4[%c0_13, %c0_14] : memref<8x16xbf16, #tpu.memory_space<vmem>>, vector<8x16xbf16>
    %cst_15 = arith.constant dense<0.000000e+00> : vector<256x16xf32>
    %16 = tpu.matmul %14, %15, %cst_15 {dimension_numbers = #tpu.dot_dimension_numbers<[1], [0], [0], [1], [0, 0, 1, 1], [], []>} : vector<256x8xbf16>, vector<8x16xbf16>, vector<256x16xf32> -> vector<256x16xf32>
    %17 = tpu.iota {dimensions = array<i32: 0>} : vector<256x1xi32>
    %c16_i32 = arith.constant 16 : i32
    %c0_i32 = arith.constant 0 : i32
    %18 = arith.cmpi eq, %c16_i32, %c0_i32 : i32
    %c1_i32 = arith.constant 1 : i32
    %19 = arith.select %18, %c1_i32, %c16_i32 : i32
    %20 = vector.broadcast %19 : i32 to vector<256x1xi32>
    %21 = arith.remsi %17, %20 : vector<256x1xi32>
    %c0_i32_16 = arith.constant 0 : i32
    %22 = vector.broadcast %c0_i32_16 : i32 to vector<256x1xi32>
    %23 = arith.cmpi ne, %21, %22 : vector<256x1xi32>
    %c0_i32_17 = arith.constant 0 : i32
    %24 = vector.broadcast %c0_i32_17 : i32 to vector<256x1xi32>
    %25 = arith.cmpi slt, %21, %24 : vector<256x1xi32>
    %c0_i32_18 = arith.constant 0 : i32
    %26 = arith.cmpi slt, %19, %c0_i32_18 : i32
    %27 = vector.broadcast %26 : i1 to vector<256x1xi1>
    %28 = vector.broadcast %27 : vector<256x1xi1> to vector<256x1xi1>
    %29 = arith.xori %25, %28 : vector<256x1xi1>
    %30 = arith.andi %29, %23 : vector<256x1xi1>
    %31 = vector.broadcast %19 : i32 to vector<256x1xi32>
    %32 = arith.addi %21, %31 : vector<256x1xi32>
    %33 = arith.select %30, %32, %21 : vector<256x1xi1>, vector<256x1xi32>
    %c0_i32_19 = arith.constant 0 : i32
    %34 = vector.broadcast %c0_i32_19 : i32 to vector<256x1xi32>
    %35 = arith.cmpi eq, %33, %34 : vector<256x1xi32>
    %c15_i32 = arith.constant 15 : i32
    %36 = vector.broadcast %c15_i32 : i32 to vector<256x1xi32>
    %37 = arith.cmpi eq, %33, %36 : vector<256x1xi32>
    %c7 = arith.constant 7 : index
    %c0_20 = arith.constant 0 : index
    %38 = vector.load %arg9[%c7, %c0_20] : memref<304x8xf32, #tpu.memory_space<vmem>>, vector<256x8xf32>
    %cst_21 = arith.constant 0.000000e+00 : f32
    %39 = vector.shape_cast %35 : vector<256x1xi1> to vector<256x1xi1>
    %40 = vector.broadcast %39 : vector<256x1xi1> to vector<256x8xi1>
    %41 = vector.broadcast %cst_21 : f32 to vector<256x8xf32>
    %42 = arith.select %40, %41, %38 : vector<256x8xi1>, vector<256x8xf32>
    %43 = arith.truncf %42 : vector<256x8xf32> to vector<256x8xbf16>
    %c8 = arith.constant 8 : index
    %c0_22 = arith.constant 0 : index
    %44 = vector.load %arg9[%c8, %c0_22] : memref<304x8xf32, #tpu.memory_space<vmem>>, vector<256x8xf32>
    %45 = arith.truncf %44 : vector<256x8xf32> to vector<256x8xbf16>
    %c9 = arith.constant 9 : index
    %c0_23 = arith.constant 0 : index
    %46 = vector.load %arg9[%c9, %c0_23] : memref<304x8xf32, #tpu.memory_space<vmem>>, vector<256x8xf32>
    %cst_24 = arith.constant 0.000000e+00 : f32
    %47 = vector.shape_cast %37 : vector<256x1xi1> to vector<256x1xi1>
    %48 = vector.broadcast %47 : vector<256x1xi1> to vector<256x8xi1>
    %49 = vector.broadcast %cst_24 : f32 to vector<256x8xf32>
    %50 = arith.select %48, %49, %46 : vector<256x8xi1>, vector<256x8xf32>
    %51 = arith.truncf %50 : vector<256x8xf32> to vector<256x8xbf16>
    %c23 = arith.constant 23 : index
    %c0_25 = arith.constant 0 : index
    %52 = vector.load %arg9[%c23, %c0_25] : memref<304x8xf32, #tpu.memory_space<vmem>>, vector<256x8xf32>
    %cst_26 = arith.constant 0.000000e+00 : f32
    %53 = vector.shape_cast %35 : vector<256x1xi1> to vector<256x1xi1>
    %54 = vector.broadcast %53 : vector<256x1xi1> to vector<256x8xi1>
    %55 = vector.broadcast %cst_26 : f32 to vector<256x8xf32>
    %56 = arith.select %54, %55, %52 : vector<256x8xi1>, vector<256x8xf32>
    %57 = arith.truncf %56 : vector<256x8xf32> to vector<256x8xbf16>
    %c24_27 = arith.constant 24 : index
    %c0_28 = arith.constant 0 : index
    %58 = vector.load %arg9[%c24_27, %c0_28] : memref<304x8xf32, #tpu.memory_space<vmem>>, vector<256x8xf32>
    %59 = arith.truncf %58 : vector<256x8xf32> to vector<256x8xbf16>
    %c25 = arith.constant 25 : index
    %c0_29 = arith.constant 0 : index
    %60 = vector.load %arg9[%c25, %c0_29] : memref<304x8xf32, #tpu.memory_space<vmem>>, vector<256x8xf32>
    %cst_30 = arith.constant 0.000000e+00 : f32
    %61 = vector.shape_cast %37 : vector<256x1xi1> to vector<256x1xi1>
    %62 = vector.broadcast %61 : vector<256x1xi1> to vector<256x8xi1>
    %63 = vector.broadcast %cst_30 : f32 to vector<256x8xf32>
    %64 = arith.select %62, %63, %60 : vector<256x8xi1>, vector<256x8xf32>
    %65 = arith.truncf %64 : vector<256x8xf32> to vector<256x8xbf16>
    %c39 = arith.constant 39 : index
    %c0_31 = arith.constant 0 : index
    %66 = vector.load %arg9[%c39, %c0_31] : memref<304x8xf32, #tpu.memory_space<vmem>>, vector<256x8xf32>
    %cst_32 = arith.constant 0.000000e+00 : f32
    %67 = vector.shape_cast %35 : vector<256x1xi1> to vector<256x1xi1>
    %68 = vector.broadcast %67 : vector<256x1xi1> to vector<256x8xi1>
    %69 = vector.broadcast %cst_32 : f32 to vector<256x8xf32>
    %70 = arith.select %68, %69, %66 : vector<256x8xi1>, vector<256x8xf32>
    %71 = arith.truncf %70 : vector<256x8xf32> to vector<256x8xbf16>
    %c40 = arith.constant 40 : index
    %c0_33 = arith.constant 0 : index
    %72 = vector.load %arg9[%c40, %c0_33] : memref<304x8xf32, #tpu.memory_space<vmem>>, vector<256x8xf32>
    %73 = arith.truncf %72 : vector<256x8xf32> to vector<256x8xbf16>
    %c41 = arith.constant 41 : index
    %c0_34 = arith.constant 0 : index
    %74 = vector.load %arg9[%c41, %c0_34] : memref<304x8xf32, #tpu.memory_space<vmem>>, vector<256x8xf32>
    %cst_35 = arith.constant 0.000000e+00 : f32
    %75 = vector.shape_cast %37 : vector<256x1xi1> to vector<256x1xi1>
    %76 = vector.broadcast %75 : vector<256x1xi1> to vector<256x8xi1>
    %77 = vector.broadcast %cst_35 : f32 to vector<256x8xf32>
    %78 = arith.select %76, %77, %74 : vector<256x8xi1>, vector<256x8xf32>
    %79 = arith.truncf %78 : vector<256x8xf32> to vector<256x8xbf16>
    %80 = tpu.concatenate %43, %45, %51, %57, %59, %65, %71, %73, %79 in 1 : vector<256x8xbf16>, vector<256x8xbf16>, vector<256x8xbf16>, vector<256x8xbf16>, vector<256x8xbf16>, vector<256x8xbf16>, vector<256x8xbf16>, vector<256x8xbf16>, vector<256x8xbf16> -> vector<256x72xbf16>
    %c0_36 = arith.constant 0 : index
    %c0_37 = arith.constant 0 : index
    %81 = vector.load %arg6[%c0_36, %c0_37] : memref<72x16xbf16, #tpu.memory_space<vmem>>, vector<72x16xbf16>
    %cst_38 = arith.constant dense<0.000000e+00> : vector<256x16xf32>
    %82 = tpu.matmul %80, %81, %cst_38 {dimension_numbers = #tpu.dot_dimension_numbers<[1], [0], [0], [1], [0, 0, 1, 1], [], []>} : vector<256x72xbf16>, vector<72x16xbf16>, vector<256x16xf32> -> vector<256x16xf32>
    %c0_39 = arith.constant 0 : index
    %c0_40 = arith.constant 0 : index
    %83 = vector.load %arg5[%c0_39, %c0_40] : memref<1x16xf32, #tpu.memory_space<vmem>>, vector<1x16xf32>
    %84 = vector.broadcast %83 : vector<1x16xf32> to vector<256x16xf32>
    %85 = arith.addf %16, %84 : vector<256x16xf32>
    %cst_41 = arith.constant 0.000000e+00 : f32
    %86 = vector.broadcast %cst_41 : f32 to vector<256x16xf32>
    %87 = arith.maximumf %85, %86 : vector<256x16xf32>
    %88 = arith.truncf %87 : vector<256x16xf32> to vector<256x16xbf16>
    %c0_42 = arith.constant 0 : index
    %c0_43 = arith.constant 0 : index
    %89 = vector.load %arg7[%c0_42, %c0_43] : memref<1x16xf32, #tpu.memory_space<vmem>>, vector<1x16xf32>
    %90 = vector.broadcast %89 : vector<1x16xf32> to vector<256x16xf32>
    %91 = arith.addf %82, %90 : vector<256x16xf32>
    %cst_44 = arith.constant 0.000000e+00 : f32
    %92 = vector.broadcast %cst_44 : f32 to vector<256x16xf32>
    %93 = arith.maximumf %91, %92 : vector<256x16xf32>
    %94 = arith.truncf %93 : vector<256x16xf32> to vector<256x16xbf16>
    %95 = tpu.concatenate %88, %94 in 1 : vector<256x16xbf16>, vector<256x16xbf16> -> vector<256x32xbf16>
    %c0_45 = arith.constant 0 : index
    %c0_46 = arith.constant 0 : index
    %c0_47 = arith.constant 0 : index
    %96 = vector.load %arg8[%c0_45, %c0_46, %c0_47] : memref<1x256x32xbf16, #tpu.memory_space<vmem>>, vector<1x256x32xbf16>
    %97 = vector.shape_cast %96 : vector<1x256x32xbf16> to vector<256x32xbf16>
    %98 = vector.shape_cast %95 : vector<256x32xbf16> to vector<1x256x32xbf16>
    tpu.vector_store %arg8[%c0_45, %c0_46, %c0_47], %98 {strides = array<i32>} : memref<1x256x32xbf16, #tpu.memory_space<vmem>>, vector<1x256x32xbf16>,
    return
  }
  func.func @transform_0(%arg0: i32) -> (i32, i32, i32) {
    %c0_i32 = arith.constant 0 : i32
    %c0_i32_0 = arith.constant 0 : i32
    %c0_i32_1 = arith.constant 0 : i32
    return %arg0, %c0_i32, %c0_i32_0 : i32, i32, i32
  }
  func.func @transform_1(%arg0: i32) -> (i32, i32) {
    %c0_i32 = arith.constant 0 : i32
    %c0_i32_0 = arith.constant 0 : i32
    %c0_i32_1 = arith.constant 0 : i32
    return %c0_i32, %c0_i32_0 : i32, i32
  }
  func.func @transform_2(%arg0: i32) -> (i32, i32) {
    %c0_i32 = arith.constant 0 : i32
    %c0_i32_0 = arith.constant 0 : i32
    %c0_i32_1 = arith.constant 0 : i32
    return %c0_i32, %c0_i32_0 : i32, i32
  }
  func.func @transform_3(%arg0: i32) -> (i32, i32) {
    %c0_i32 = arith.constant 0 : i32
    %c0_i32_0 = arith.constant 0 : i32
    %c0_i32_1 = arith.constant 0 : i32
    return %c0_i32, %c0_i32_0 : i32, i32
  }
  func.func @transform_4(%arg0: i32) -> (i32, i32) {
    %c0_i32 = arith.constant 0 : i32
    %c0_i32_0 = arith.constant 0 : i32
    %c0_i32_1 = arith.constant 0 : i32
    return %c0_i32, %c0_i32_0 : i32, i32
  }
  func.func @transform_5(%arg0: i32) -> (i32, i32) {
    %c0_i32 = arith.constant 0 : i32
    %c0_i32_0 = arith.constant 0 : i32
    %c0_i32_1 = arith.constant 0 : i32
    return %c0_i32, %c0_i32_0 : i32, i32
  }
  func.func @transform_6(%arg0: i32) -> (i32, i32) {
    %c0_i32 = arith.constant 0 : i32
    %c0_i32_0 = arith.constant 0 : i32
    %c0_i32_1 = arith.constant 0 : i32
    return %c0_i32, %c0_i32_0 : i32, i32
  }
  func.func @transform_7(%arg0: i32) -> (i32, i32, i32) {
    %c0_i32 = arith.constant 0 : i32
    %c0_i32_0 = arith.constant 0 : i32
    %c0_i32_1 = arith.constant 0 : i32
    return %arg0, %c0_i32, %c0_i32_0 : i32, i32, i32
  }
}

</mosaic_0001>

<bundles_post_ra>
// kernel: _lambda_.1
= control target key start
LH: loop header
LB: loop body
LE: loop exit
PB: predicated region body
PF: predicated region fallthrough
CT: control target
= control target key end

     0   :  { %12 = vsyncpa [#allocation4], 0  ;;  %s5220_s0 = inlined_call_operand.vmem [shape: bf16[2,256,4], index: 0, kind: input, shape index: {}]   ;;  %s5221_s1 = inlined_call_operand.vmem [shape: bf16[4,8], index: 1, kind: input, shape index: {}]   ;;  %s5222_s2 = inlined_call_operand.vmem [shape: f32[1,8], index: 2, kind: input, shape index: {}]   ;;  %s5223_s3 = inlined_call_operand.vmem [shape: bf16[8,16], index: 3, kind: input, shape index: {}]   ;;  %s5224_s4 = inlined_call_operand.vmem [shape: f32[1,16], index: 4, kind: input, shape index: {}]   ;;  %s5225_s5 = inlined_call_operand.vmem [shape: bf16[72,16], index: 5, kind: input, shape index: {}]   ;;  %s5226_s6 = inlined_call_operand.vmem [shape: f32[1,16], index: 6, kind: input, shape index: {}]   ;;  %s5227_s7 = inlined_call_operand.hbm [shape: bf16[2,256,32], index: 7, kind: output, shape index: {}]  }
   0x1   :  { %14 = vsyncpa [#allocation4 + $0x1], 0  ;;  %s3703_s24 = smov 0   ;;  %s3705_s25 = smov 0  }
   0x2   :  { %s3707_s26 = smov 0   ;;  %s3709_s27 = smov 0  }
   0x3 LB: > { %s3724_s28 = sadd.s32 4294967295, %s3650_s27   ;;  %s3229_s29 = sadd.s32 4294967294, %s3650_s27   ;;  %s3650_s27 = sphi %s3709_s27, %s5430_s27   ;;  %s3646_s26 = sphi %s3707_s26, %s5429_s26   ;;  %s3642_s25 = sphi %s3705_s25, %s5428_s25   ;;  %s3638_s24 = sphi %s3703_s24, %s5427_s24  }
   0x4   : > { %s3728_s30 = sadd.s32 1, %s3650_s27   ;;  %s179_s8 = sadd.s32 1, %s3646_s26 }
   0x5   : > { %s176_s9 = ssub.s32 %s3650_s27, %s3728_s30  ;;  %p189_p0 = scmp.ne.s32.totalorder %s3646_s26, %s3642_s25 }
   0x6   : > { %p177_p1 = scmp.eq.s32.totalorder %s176_s9, 0  ;;  %p190_p2 = scmp.eq.s32.totalorder %s3724_s28, 1 }
   0x7   : > { %p195_p3 = scmp.ne.s32.totalorder %s3642_s25, %s3638_s24  ;;  %p196_p4 = scmp.eq.s32.totalorder %s3229_s29, 1 }
   0x8   : > { %s3739_s10 = scalar_select %p177_p1, %s3646_s26, %s179_s8  }
   0x9   : > { %p3741_p5 = por %p190_p2, %p189_p0  ;;  %p3745_p6 = por %p196_p4, %p195_p3 }
   0xa   : > { %p3232_p7 = scmp.ge.s32.totalorder %s3650_s27, 1  ;;  %p240_p8 = scmp.lt.s32.totalorder %s3650_s27, 3 }
   0xc   : > { %p241_p9 = pnand %p3232_p7, %p240_p8 }
   0xe   : > { %244 = sbr.rel (%p241_p9) target bundleno = 979 (0x3d3), region = 48 }
  0x15   : > { %v310_v0 = vld [vmem:[%s5221_s1] sm:$0x3]  ;;  %vm447_vm0 = vcmask 1041408   ;;  %p272_p10 = scmp.lt.s32.totalorder %s3724_s28, 1  ;;  %vm398_vm1 = vcmask 31744   ;;  %vm5229_vm2 = vcmask 64512   ;;  %v700_v24 = vlaneseq }
  0x16   : > { %3514 = vmatprep.subr.msk.bf16.mxu0 %vm447_vm0, %v310_v0  ;;  %3515 = vmatprep.subr.msk.bf16.mxu1 %vm447_vm0, %v310_v0  ;;  %v449_v1 = vsel %vm447_vm0, %v310_v0, 0  ;;  %v3652_v18 = vmov 0.0   ;;  %v699_v19 = vld [vmem:[%s5223_s3] sm:$0xf]  ;;  %vm5228_vm3 = vcmask 1043456   ;;  %s3653_s22 = smov 8  }
  0x17   : > { %3403 = vmatpush3.bf16.msra.mxu0 %v449_v1  ;;  %3513 = vmatpush3.bf16.msra.mxu1 %v449_v1  ;;  %s273_s15 = scalar_select %p272_p10, %s3724_s28, 1  ;;  %646 = vst.msk [vmem:[#allocation2 + $0x8] sm:$0xff] %vm5229_vm2, %v3652_v18  ;;  %647 = vst.msk [vmem:[#allocation2 + $0x10] sm:$0xff] %vm5229_vm2, %v3652_v18  ;;  %v2422_v20 = vsel %vm5228_vm3, %v699_v19, 0  ;;  %v3808_v25 = vld [vmem:[%s5222_s2] ss:$0 sm:$0xff] }
  0x18   : > { %645 = vst.msk [vmem:[#allocation2] sm:$0xff] %vm5229_vm2, %v3652_v18  ;;  %648 = vst.msk [vmem:[#allocation2 + $0x118] sm:$0xff] %vm5229_vm2, %v3652_v18  ;;  %3516 = vmatprep.subr.msk.bf16.mxu1 %vm5228_vm3, %v699_v19  ;;  %v3810_v26 = vshrl.u32 %v700_v24, 7  ;;  %s3654_s8 = smov 56   ;;  %s3655_s9 = smov 16  }
  0x19   : > { %s3345_s16 = sshll.u32 %s273_s15, 7  ;;  %649 = vst.msk [vmem:[#allocation2 + $0x120] sm:$0xff] %vm5229_vm2, %v3652_v18  ;;  %650 = vst.msk [vmem:[#allocation2 + $0x128] sm:$0xff] %vm5229_vm2, %v3652_v18  ;;  %s3656_s13 = smov 32  }
  0x1a   : > { %s3759_s19 = scalar_lea.vmem %s5220_s0, %s3345_s16  ;;  %v702_v35 = vadd.s32 8, %v3810_v26  ;;  %v703_v41 = vadd.s32 16, %v3810_v26  ;;  %s3657_s14 = smov 24  }
  0x1b   : > { %v3567_v2 = vld [vmem:[%s3759_s19] sm:$0xff]   ;;  %v3569_v4 = vld [vmem:[%s3759_s19 + $0x8] sm:$0xff]   ;;  %v3571_v6 = vld [vmem:[%s3759_s19 + $0x10] sm:$0xff]   ;;  %s3658_s15 = smov 40   ;;  %s3659_s16 = smov 48  }
  0x1c   : > { %v3568_v3 = vld [vmem:[%s3759_s19 + $0x40] sm:$0xff]   ;;  %3404 = vmatprep.mubr.msk.bf16.mxu0 %vm398_vm1, %v3567_v2  ;;  %v3570_v5 = vld [vmem:[%s3759_s19 + $0x48] sm:$0xff]   ;;  %v3572_v7 = vld [vmem:[%s3759_s19 + $0x50] sm:$0xff]   ;;  %v744_v52 = vand.u32 15, %v702_v35  ;;  %v751_v55 = vand.u32 15, %v703_v41  ;;  %s3660_s17 = smov 64  }
  0x1d   : > { %3420 = vmatprep.mubr.msk.bf16.mxu1 %vm398_vm1, %v3568_v3  ;;  %3405 = vmatmul.mubr.msk.bf16.vlgmr.msra.gmra.mrb[0].mxu0 %vm398_vm1, %v3569_v4  ;;  %v3573_v8 = vld [vmem:[%s3759_s19 + $0x18] sm:$0xff]   ;;  %v3575_v10 = vld [vmem:[%s3759_s19 + $0x20] sm:$0xff]   ;;  %v3576_v12 = vld [vmem:[%s3759_s19 + $0x28] sm:$0xff]   ;;  %v711_v3 = vadd.s32 80, %v3810_v26  ;;  %s3661_s23 = smov [#allocation3]  }
  0x1e   : > { %3421 = vmatmul.mubr.msk.bf16.vlgmr.msra.gmra.mrb[0].mxu1 %vm398_vm1, %v3570_v5  ;;  %3408 = vmatprep.mubr.msk.bf16.mxu0 %vm398_vm1, %v3571_v6  ;;  %v3574_v9 = vld [vmem:[%s3759_s19 + $0x58] sm:$0xff]   ;;  %v3579_v11 = vld [vmem:[%s3759_s19 + $0x60] sm:$0xff]   ;;  %v3577_v13 = vld [vmem:[%s3759_s19 + $0x30] sm:$0xff]   ;;  %vm3838_vm4 = vcmp.eq.s32.totalorder %v744_v52, 15  ;;  %vm3845_vm5 = vcmp.eq.s32.totalorder %v751_v55, 0  ;;  %v5252_v55 = vmov 0 }
  0x1f   : > { %3424 = vmatprep.mubr.msk.bf16.mxu1 %vm398_vm1, %v3572_v7  ;;  %v3580_v14 = vld [vmem:[%s3759_s19 + $0x68] sm:$0xff]   ;;  %v3581_v15 = vld [vmem:[%s3759_s19 + $0x70] sm:$0xff]   ;;  %v3578_v16 = vld [vmem:[%s3759_s19 + $0x38] sm:$0xff]   ;;  %3437 = vmatpush3.bf16.msra.mxu1 %v2422_v20  ;;  %s3592_s29 = sshll.u32 %s3661_s23, 4  ;;  %s3593_s29 = int_to_ptr.vmem [resolvable:$false] %s3592_s29 }
  0x20   : > { %v3582_v17 = vld [vmem:[%s3759_s19 + $0x78] sm:$0xff]   ;;  %v1325_v21 = vld [vmem:[#allocation2 + $0x8] sm:$0xff]  ;;  %v1326_v22 = vld [vmem:[#allocation2 + $0x10] sm:$0xff] }
  0x21   : > { %v1357_v23 = vpack.c.bf16 %v1326_v22, %v1325_v21 }
  0x23   : > { %1739 = vrot.lane.b32.xlu0 %v1357_v23, %s3653_s22 }
  0x25   : > { %3409 = vmatmul.mubr.msk.bf16.gmra.mrb[4].mxu0 %vm398_vm1, %v3573_v8 }
  0x26   : > { %3425 = vmatmul.mubr.msk.bf16.gmra.mrb[4].mxu1 %vm398_vm1, %v3574_v9  ;;  %3412 = vmatprep.mubr.msk.bf16.mxu0 %vm398_vm1, %v3575_v10 }
  0x27   : > { %3428 = vmatprep.mubr.msk.bf16.mxu1 %vm398_vm1, %v3579_v11 }
  0x2d   : > { %3413 = vmatmul.mubr.msk.bf16.gmra.mrb[8].mxu0 %vm398_vm1, %v3576_v12 }
  0x2e   : > { %3416 = vmatprep.mubr.msk.bf16.mxu0 %vm398_vm1, %v3577_v13  ;;  %3429 = vmatmul.mubr.msk.bf16.gmra.mrb[8].mxu1 %vm398_vm1, %v3580_v14 }
  0x2f   : > { %3432 = vmatprep.mubr.msk.bf16.mxu1 %vm398_vm1, %v3581_v15  ;;  %v1373_v15 = vld [vmem:[#allocation2 + $0x9] sm:$0xff] }
  0x35   : > { %3417 = vmatmul.mubr.msk.bf16.gmra.mrb[12].mxu0 %vm398_vm1, %v3578_v16 }
  0x36   : > { %3433 = vmatmul.mubr.msk.bf16.gmra.mrb[12].mxu1 %vm398_vm1, %v3582_v17 }
  0xf0   : > { %v3406_v27 = vpop.f32.mrb[0].mxu0 }
  0xf1   : > { %v494_v28 = vadd.f32 %v3406_v27, %v3808_v25  ;;  %v485_v29 = vpop.f32.mrb[1].mxu0  ;;  %v3422_v30 = vpop.f32.mrb[0].mxu1 }
  0xf2   : > { %v486_v31 = vadd.f32 %v3808_v25, %v485_v29  ;;  %v3407_v32 = vpop.f32.mrb[2].mxu0  ;;  %v558_v33 = vadd.f32 %v3422_v30, %v3808_v25  ;;  %v549_v34 = vpop.f32.mrb[1].mxu1 }
  0xf3   : > { %v614_v36 = vmax.f32 %v494_v28, 0.0  ;;  %v497_v37 = vadd.f32 %v3407_v32, %v3808_v25  ;;  %v488_v38 = vpop.f32.mrb[3].mxu0  ;;  %v550_v39 = vadd.f32 %v3808_v25, %v549_v34  ;;  %v3423_v40 = vpop.f32.mrb[2].mxu1 }
  0xf4   : > { %v612_v42 = vmax.f32 %v486_v31, 0.0  ;;  %v489_v43 = vadd.f32 %v3808_v25, %v488_v38  ;;  %v630_v44 = vmax.f32 %v558_v33, 0.0  ;;  %v561_v45 = vadd.f32 %v3423_v40, %v3808_v25  ;;  %v552_v46 = vpop.f32.mrb[3].mxu1 }
  0xf5   : > { %653 = vst.msk [vmem:[#allocation2 + $0x28] sm:$0xff] %vm5229_vm2, %v614_v36  ;;  %v615_v47 = vmax.f32 %v497_v37, 0.0  ;;  %v628_v48 = vmax.f32 %v550_v39, 0.0  ;;  %v553_v49 = vadd.f32 %v3808_v25, %v552_v46  ;;  %v737_v38 = vand.u32 15, %v3810_v26 }
  0xf6   : > { %651 = vst.msk [vmem:[#allocation2 + $0x18] sm:$0xff] %vm5229_vm2, %v612_v42  ;;  %v613_v50 = vmax.f32 %v489_v43, 0.0  ;;  %669 = vst.msk [vmem:[#allocation2 + $0xa8] sm:$0xff] %vm5229_vm2, %v630_v44  ;;  %v631_v51 = vmax.f32 %v561_v45, 0.0 }
  0xf7   : > { %654 = vst.msk [vmem:[#allocation2 + $0x30] sm:$0xff] %vm5229_vm2, %v615_v47  ;;  %v684_v53 = vpack.c.bf16 %v615_v47, %v614_v36  ;;  %667 = vst.msk [vmem:[#allocation2 + $0x98] sm:$0xff] %vm5229_vm2, %v628_v48  ;;  %v629_v54 = vmax.f32 %v553_v49, 0.0  ;;  %vm3884_vm6 = vcmp.eq.s32.totalorder %v737_v38, 0 }
  0xf8   : > { %652 = vst.msk [vmem:[#allocation2 + $0x20] sm:$0xff] %vm5229_vm2, %v613_v50  ;;  %v683_v56 = vpack.c.bf16 %v613_v50, %v612_v42  ;;  %670 = vst.msk [vmem:[#allocation2 + $0xb0] sm:$0xff] %vm5229_vm2, %v631_v51  ;;  %v3829_v57 = vpack.c.bf16 %v631_v51, %v630_v44  ;;  %v3410_v58 = vpop.f32.mrb[4].mxu0  ;;  %v5253_v55 = vsel %vm3884_vm6, 4294967295, %v5252_v55 }
  0xf9   : > { %668 = vst.msk [vmem:[#allocation2 + $0xa0] sm:$0xff] %vm5229_vm2, %v629_v54  ;;  %v3832_v59 = vpack.c.bf16 %v629_v54, %v628_v48  ;;  %v510_v60 = vadd.f32 %v3410_v58, %v3808_v25  ;;  %v3426_v61 = vpop.f32.mrb[4].mxu1  ;;  %v501_v62 = vpop.f32.mrb[5].mxu0 }
  0xfa   : > { %v574_v63 = vadd.f32 %v3426_v61, %v3808_v25  ;;  %v502_v0 = vadd.f32 %v3808_v25, %v501_v62  ;;  %v565_v1 = vpop.f32.mrb[5].mxu1  ;;  %v3411_v2 = vpop.f32.mrb[6].mxu0  ;;  %3438 = vmatprep.mubr.msk.bf16.mxu1 %vm5229_vm2, %v683_v56 }
  0xfb   : > { %v618_v4 = vmax.f32 %v510_v60, 0.0  ;;  %v566_v5 = vadd.f32 %v3808_v25, %v565_v1  ;;  %v513_v6 = vadd.f32 %v3411_v2, %v3808_v25  ;;  %v3427_v7 = vpop.f32.mrb[6].mxu1  ;;  %v504_v8 = vpop.f32.mrb[7].mxu0  ;;  %3439 = vmatmul.mubr.msk.bf16.vlgmr.msra.gmra.mrb[16].mxu1 %vm5229_vm2, %v684_v53 }
  0xfc   : > { %v634_v10 = vmax.f32 %v574_v63, 0.0  ;;  %v616_v11 = vmax.f32 %v502_v0, 0.0  ;;  %v577_v12 = vadd.f32 %v3427_v7, %v3808_v25  ;;  %v505_v13 = vadd.f32 %v3808_v25, %v504_v8  ;;  %v568_v14 = vpop.f32.mrb[7].mxu1  ;;  %v1329_v19 = vld [vmem:[#allocation2 + $0x28] sm:$0xff] }
  0xfd   : > { %657 = vst.msk [vmem:[#allocation2 + $0x48] sm:$0xff] %vm5229_vm2, %v618_v4  ;;  %v632_v16 = vmax.f32 %v566_v5, 0.0  ;;  %v619_v17 = vmax.f32 %v513_v6, 0.0  ;;  %v569_v18 = vadd.f32 %v3808_v25, %v568_v14  ;;  %v1374_v20 = vld [vmem:[#allocation2 + $0x11] sm:$0xff]  ;;  %v1345_v27 = vld [vmem:[#allocation2 + $0xa8] sm:$0xff] }
  0xfe   : > { %673 = vst.msk [vmem:[#allocation2 + $0xc8] sm:$0xff] %vm5229_vm2, %v634_v10  ;;  %655 = vst.msk [vmem:[#allocation2 + $0x38] sm:$0xff] %vm5229_vm2, %v616_v11  ;;  %v635_v21 = vmax.f32 %v577_v12, 0.0  ;;  %v617_v22 = vmax.f32 %v505_v13, 0.0  ;;  %v1330_v23 = vld [vmem:[#allocation2 + $0x30] sm:$0xff]  ;;  %v1470_v24 = vsel %vm3838_vm4, 0.0, %v1374_v20 }
  0xff   : > { %v3857_v28 = vld [vmem:[#allocation2 + $0x17] sm:$0xff]  ;;  %671 = vst.msk [vmem:[#allocation2 + $0xb8] sm:$0xff] %vm5229_vm2, %v632_v16  ;;  %658 = vst.msk [vmem:[#allocation2 + $0x50] sm:$0xff] %vm5229_vm2, %v619_v17  ;;  %v686_v29 = vpack.c.bf16 %v619_v17, %v618_v4  ;;  %v633_v30 = vmax.f32 %v569_v18, 0.0  ;;  %v1359_v31 = vpack.c.bf16 %v1330_v23, %v1329_v19  ;;  %v1501_v32 = vpack.c.bf16 %v1470_v24, %v1373_v15  ;;  %v1184_v34 = vld [vmem:[#allocation2 + $0x1f] sm:$0xff] }
 0x100   : > { %v1346_v33 = vld [vmem:[#allocation2 + $0xb0] sm:$0xff]  ;;  %674 = vst.msk [vmem:[#allocation2 + $0xd0] sm:$0xff] %vm5229_vm2, %v635_v21  ;;  %v3862_v35 = vpack.c.bf16 %v635_v21, %v634_v10  ;;  %656 = vst.msk [vmem:[#allocation2 + $0x40] sm:$0xff] %vm5229_vm2, %v617_v22  ;;  %v685_v36 = vpack.c.bf16 %v617_v22, %v616_v11  ;;  %v3414_v37 = vpop.f32.mrb[8].mxu0  ;;  %v1279_v43 = vsel %vm3845_vm5, 0.0, %v3857_v28  ;;  %v1328_v54 = vld [vmem:[#allocation2 + $0x20] sm:$0xff] }
 0x101   : > { %672 = vst.msk [vmem:[#allocation2 + $0xc0] sm:$0xff] %vm5229_vm2, %v633_v30  ;;  %v3867_v39 = vpack.c.bf16 %v633_v30, %v632_v16  ;;  %v526_v40 = vadd.f32 %v3414_v37, %v3808_v25  ;;  %1997 = vrot.lane.b32.xlu0 %v1359_v31, %s3654_s8  ;;  %v517_v41 = vpop.f32.mrb[9].mxu0  ;;  %1787 = vrot.lane.b32.xlu1 %v1501_v32, %s3655_s9  ;;  %v3430_v47 = vpop.f32.mrb[8].mxu1  ;;  %v1327_v62 = vld [vmem:[#allocation2 + $0x18] sm:$0xff]  ;;  %v1519_v1 = vsel %vm3884_vm6, 0.0, %v3857_v28 }
 0x102   : > { %v3872_v42 = vpack.c.bf16 %v1346_v33, %v1345_v27  ;;  %v518_v44 = vadd.f32 %v3808_v25, %v517_v41  ;;  %v3415_v45 = vpop.f32.mrb[10].mxu0  ;;  %3442 = vmatprep.mubr.msk.bf16.mxu1 %vm5229_vm2, %v685_v36  ;;  %v3879_v46 = vpack.c.bf16 %v1184_v34, %v1279_v43  ;;  %v581_v51 = vpop.f32.mrb[9].mxu1  ;;  %v1358_v0 = vpack.c.bf16 %v1328_v54, %v1327_v62  ;;  %v1343_v38 = vld [vmem:[#allocation2 + $0x98] sm:$0xff]  ;;  %v1376_v41 = vld [vmem:[#allocation2 + $0x21] sm:$0xff] }
 0x103   : > { %v622_v48 = vmax.f32 %v526_v40, 0.0  ;;  %v529_v49 = vadd.f32 %v3415_v45, %v3808_v25  ;;  %v520_v50 = vpop.f32.mrb[11].mxu0  ;;  %3443 = vmatmul.mubr.msk.bf16.gmra.mrb[20].mxu1 %vm5229_vm2, %v686_v29  ;;  %v3431_v56 = vpop.f32.mrb[10].mxu1  ;;  %v590_v2 = vadd.f32 %v3430_v47, %v3808_v25  ;;  %v582_v6 = vadd.f32 %v3808_v25, %v581_v51  ;;  %v1344_v40 = vld [vmem:[#allocation2 + $0xa0] sm:$0xff] }
 0x104   : > { %v620_v52 = vmax.f32 %v518_v44, 0.0  ;;  %v521_v53 = vadd.f32 %v3808_v25, %v520_v50  ;;  %v584_v60 = vpop.f32.mrb[11].mxu1  ;;  %v593_v11 = vadd.f32 %v3431_v56, %v3808_v25  ;;  %v1551_v16 = vpack.c.bf16 %v1184_v34, %v1519_v1 }
 0x105   : > { %661 = vst.msk [vmem:[#allocation2 + $0x68] sm:$0xff] %vm5229_vm2, %v622_v48  ;;  %v623_v58 = vmax.f32 %v529_v49, 0.0  ;;  %2013 = vrot.lane.b32.xlu0 %v3872_v42, %s3654_s8  ;;  %1870 = vrot.lane.b32.xlu1 %v1359_v31, %s3656_s13  ;;  %v638_v10 = vmax.f32 %v590_v2, 0.0  ;;  %v585_v12 = vadd.f32 %v3808_v25, %v584_v60  ;;  %v636_v17 = vmax.f32 %v582_v6, 0.0  ;;  %v1331_v9 = vld [vmem:[#allocation2 + $0x38] sm:$0xff] }
 0x106   : > { %659 = vst.msk [vmem:[#allocation2 + $0x58] sm:$0xff] %vm5229_vm2, %v620_v52  ;;  %v621_v61 = vmax.f32 %v521_v53, 0.0  ;;  %v639_v21 = vmax.f32 %v593_v11, 0.0  ;;  %v704_v29 = vadd.s32 24, %v3810_v26  ;;  %v716_v44 = vadd.s32 120, %v3810_v26 }
 0x107   : > { %662 = vst.msk [vmem:[#allocation2 + $0x70] sm:$0xff] %vm5229_vm2, %v623_v58  ;;  %v688_v63 = vpack.c.bf16 %v623_v58, %v622_v48  ;;  %677 = vst.msk [vmem:[#allocation2 + $0xe8] sm:$0xff] %vm5229_vm2, %v638_v10  ;;  %v637_v22 = vmax.f32 %v585_v12, 0.0  ;;  %v705_v45 = vadd.s32 32, %v3810_v26  ;;  %v1366_v47 = vpack.c.bf16 %v1344_v40, %v1343_v38 }
 0x108   : > { %660 = vst.msk [vmem:[#allocation2 + $0x60] sm:$0xff] %vm5229_vm2, %v621_v61  ;;  %v687_v4 = vpack.c.bf16 %v621_v61, %v620_v52  ;;  %v3418_v5 = vpop.f32.mrb[12].mxu0  ;;  %675 = vst.msk [vmem:[#allocation2 + $0xd8] sm:$0xff] %vm5229_vm2, %v636_v17  ;;  %v3920_v30 = vpack.c.bf16 %v639_v21, %v638_v10  ;;  %v758_v43 = vand.u32 15, %v704_v29  ;;  %v720_v48 = vadd.s32 152, %v3810_v26  ;;  %v1185_v52 = vld [vmem:[#allocation2 + $0x27] sm:$0xff] }
 0x109   : > { %v542_v7 = vadd.f32 %v3418_v5, %v3808_v25  ;;  %v533_v8 = vpop.f32.mrb[13].mxu0  ;;  %1743 = vrot.lane.b32.xlu1 %v1359_v31, %s3653_s22  ;;  %1741 = vrot.lane.b32.xlu0 %v1358_v0, %s3653_s22  ;;  %v3905_v13 = vpop.f32.mrb[12].mxu1  ;;  %678 = vst.msk [vmem:[#allocation2 + $0xf0] sm:$0xff] %vm5229_vm2, %v639_v21  ;;  %676 = vst.msk [vmem:[#allocation2 + $0xe0] sm:$0xff] %vm5229_vm2, %v637_v22  ;;  %v3923_v31 = vpack.c.bf16 %v637_v22, %v636_v17  ;;  %v718_v49 = vadd.s32 136, %v3810_v26  ;;  %v1392_v5 = vld [vmem:[#allocation2 + $0xa1] sm:$0xff] }
 0x10a   : > { %v534_v14 = vadd.f32 %v3808_v25, %v533_v8  ;;  %v3419_v15 = vpop.f32.mrb[14].mxu0  ;;  %3446 = vmatprep.mubr.msk.bf16.mxu1 %vm5229_vm2, %v687_v4  ;;  %v597_v27 = vpop.f32.mrb[13].mxu1  ;;  %v1573_v50 = vsel %vm3838_vm4, 0.0, %v1376_v41  ;;  %vm3943_vm7 = vcmp.eq.s32.totalorder %v758_v43, 15  ;;  %v842_v53 = vand.u32 15, %v716_v44  ;;  %v1186_v10 = vld [vmem:[#allocation2 + $0x2f] sm:$0xff] }
 0x10b   : > { %v626_v18 = vmax.f32 %v542_v7, 0.0  ;;  %v545_v19 = vadd.f32 %v3419_v15, %v3808_v25  ;;  %v536_v20 = vpop.f32.mrb[15].mxu0  ;;  %3447 = vmatmul.mubr.msk.bf16.gmra.mrb[24].mxu1 %vm5229_vm2, %v688_v63  ;;  %v3435_v32 = vpop.f32.mrb[14].mxu1  ;;  %v721_v54 = vadd.s32 160, %v3810_v26  ;;  %v719_v56 = vadd.s32 144, %v3810_v26 }
 0x10c   : > { %v624_v23 = vmax.f32 %v534_v14, 0.0  ;;  %v537_v24 = vadd.f32 %v3808_v25, %v536_v20  ;;  %v600_v34 = vpop.f32.mrb[15].mxu1  ;;  %v765_v58 = vand.u32 15, %v705_v45  ;;  %v870_v60 = vand.u32 15, %v720_v48  ;;  %v1391_v20 = vld [vmem:[#allocation2 + $0x99] sm:$0xff] }
 0x10d   : > { %665 = vst.msk [vmem:[#allocation2 + $0x88] sm:$0xff] %vm5229_vm2, %v626_v18  ;;  %v627_v28 = vmax.f32 %v545_v19, 0.0  ;;  %1886 = vrot.lane.b32.xlu1 %v3872_v42, %s3656_s13  ;;  %1835 = vrot.lane.b32.xlu0 %v1551_v16, %s3657_s14  ;;  %v856_v61 = vand.u32 15, %v718_v49  ;;  %v717_v62 = vadd.s32 128, %v3810_v26  ;;  %v1472_v63 = vsel %vm3943_vm7, 0.0, %v1376_v41  ;;  %v4025_v48 = vld [vmem:[#allocation2 + $0x9f] sm:$0xff] }
 0x10e   : > { %663 = vst.msk [vmem:[#allocation2 + $0x78] sm:$0xff] %vm5229_vm2, %v624_v23  ;;  %v625_v33 = vmax.f32 %v537_v24, 0.0  ;;  %v606_v1 = vadd.f32 %v3905_v13, %v3808_v25  ;;  %v598_v2 = vadd.f32 %v3808_v25, %v597_v27  ;;  %vm3959_vm8 = vcmp.eq.s32.totalorder %v842_v53, 15 }
 0x10f   : > { %666 = vst.msk [vmem:[#allocation2 + $0x90] sm:$0xff] %vm5229_vm2, %v627_v28  ;;  %v690_v36 = vpack.c.bf16 %v627_v28, %v626_v18  ;;  %v5256_v4 = vmov 0  ;;  %v877_v6 = vand.u32 15, %v721_v54  ;;  %v609_v7 = vadd.f32 %v3435_v32, %v3808_v25  ;;  %v1202_v28 = vld [vmem:[#allocation2 + $0xaf] sm:$0xff] }
 0x110   : > { %664 = vst.msk [vmem:[#allocation2 + $0x80] sm:$0xff] %vm5229_vm2, %v625_v33  ;;  %v689_v37 = vpack.c.bf16 %v625_v33, %v624_v23  ;;  %v5257_v4 = vsel %vm3959_vm8, 4294967295, %v5256_v4  ;;  %v601_v8 = vadd.f32 %v3808_v25, %v600_v34  ;;  %v863_v11 = vand.u32 15, %v719_v56 }
 0x111   : > { %1759 = vrot.lane.b32.xlu1 %v3872_v42, %s3653_s22  ;;  %1868 = vrot.lane.b32.xlu0 %v1358_v0, %s3656_s13  ;;  %v1375_v42 = vld [vmem:[#allocation2 + $0x19] sm:$0xff]  ;;  %v1622_v0 = vsel %vm3884_vm6, 0.0, %v1185_v52  ;;  %vm3965_vm9 = vcmp.eq.s32.totalorder %v765_v58, 0  ;;  %v642_v13 = vmax.f32 %v606_v1, 0.0  ;;  %v640_v14 = vmax.f32 %v598_v2, 0.0  ;;  %v4046_v1 = vld [vmem:[#allocation2 + $0x47] sm:$0xff] }
 0x112   : > { %3450 = vmatprep.mubr.msk.bf16.mxu1 %vm5229_vm2, %v689_v37  ;;  %v1502_v15 = vpack.c.bf16 %v1472_v63, %v1375_v42  ;;  %v1654_v16 = vpack.c.bf16 %v1186_v10, %v1622_v0  ;;  %v643_v17 = vmax.f32 %v609_v7, 0.0  ;;  %v641_v18 = vmax.f32 %v601_v8, 0.0  ;;  %v4352_v8 = vpop.permute.xlu0 %1739 }
 0x113   : > { %3451 = vmatmul.mubr.msk.bf16.gmra.mrb[28].mxu1 %vm5229_vm2, %v690_v36  ;;  %v1521_v19 = vsel %vm3845_vm5, 0.0, %v1185_v52  ;;  %v1690_v25 = vsel %vm3959_vm8, 0.0, %v1392_v5  ;;  %vm3975_vm10 = vcmp.eq.s32.totalorder %v870_v60, 15  ;;  %vm3979_vm11 = vcmp.eq.s32.totalorder %v856_v61, 15  ;;  %681 = vst.msk [vmem:[#allocation2 + $0x108] sm:$0xff] %vm5229_vm2, %v642_v13  ;;  %679 = vst.msk [vmem:[#allocation2 + $0xf8] sm:$0xff] %vm5229_vm2, %v640_v14 }
 0x114   : > { %3454 = vmatprep.mubr.msk.bf16.mxu1 %vm5229_vm2, %v3832_v59  ;;  %v1604_v59 = vpack.c.bf16 %v1573_v50, %v1375_v42  ;;  %v5262_v22 = vmov 0  ;;  %v849_v23 = vand.u32 15, %v717_v62  ;;  %vm3989_vm12 = vcmp.eq.s32.totalorder %v877_v6, 0  ;;  %682 = vst.msk [vmem:[#allocation2 + $0x110] sm:$0xff] %vm5229_vm2, %v643_v17  ;;  %680 = vst.msk [vmem:[#allocation2 + $0x100] sm:$0xff] %vm5229_vm2, %v641_v18  ;;  %v4056_v6 = vld [vmem:[#allocation2 + $0x4f] sm:$0xff] }
 0x115   : > { %2011 = vrot.lane.b32.xlu1 %v1366_v47, %s3654_s8  ;;  %1884 = vrot.lane.b32.xlu0 %v1366_v47, %s3656_s13  ;;  %v5263_v22 = vsel %vm3979_vm11, 4294967295, %v5262_v22  ;;  %v3994_v27 = vpack.c.bf16 %v643_v17, %v642_v13  ;;  %v1281_v29 = vsel %vm3965_vm9, 0.0, %v1185_v52  ;;  %v1552_v32 = vpack.c.bf16 %v1186_v10, %v1521_v19  ;;  %v4064_v13 = vld [vmem:[#allocation2 + $0xc7] sm:$0xff]  ;;  %v4075_v19 = vld [vmem:[#allocation2 + $0xcf] sm:$0xff] }
 0x116   : > { %v1714_v33 = vpack.c.bf16 %v1690_v25, %v1391_v20  ;;  %v4001_v34 = vpack.c.bf16 %v1186_v10, %v1281_v29  ;;  %v709_v36 = vadd.s32 64, %v3810_v26  ;;  %v4004_v37 = vld [vmem:[#allocation2 + $0x97] sm:$0xff]  ;;  %v1488_v38 = vsel %vm3975_vm10, 0.0, %v1392_v5  ;;  %v1377_v10 = vld [vmem:[#allocation2 + $0x29] sm:$0xff] }
 0x117   : > { %v1589_v40 = vsel %vm3979_vm11, 0.0, %v1392_v5  ;;  %vm4014_vm13 = vcmp.eq.s32.totalorder %v863_v11, 0  ;;  %vm4018_vm14 = vcmp.eq.s32.totalorder %v849_v23, 0  ;;  %v706_v45 = vadd.s32 40, %v3810_v26  ;;  %v1333_v25 = vld [vmem:[#allocation2 + $0x48] sm:$0xff] }
 0x118   : > { %v1295_v49 = vsel %vm4014_vm13, 0.0, %v4004_v37  ;;  %v725_v42 = vadd.s32 192, %v3810_v26  ;;  %v1510_v50 = vpack.c.bf16 %v1488_v38, %v1391_v20  ;;  %v1612_v52 = vpack.c.bf16 %v1589_v40, %v1391_v20  ;;  %v4282_v43 = vld [vmem:[#allocation2 + $0x8f] sm:$0xff]  ;;  %v1351_v38 = vld [vmem:[#allocation2 + $0xd8] sm:$0xff] }
 0x119   : > { %1757 = vrot.lane.b32.xlu1 %v1366_v47, %s3653_s22  ;;  %1916 = vrot.lane.b32.xlu0 %v1604_v59, %s3658_s15  ;;  %v793_v53 = vand.u32 15, %v709_v36  ;;  %v4034_v54 = vpack.c.bf16 %v4025_v48, %v1295_v49  ;;  %v707_v59 = vadd.s32 48, %v3810_v26  ;;  %v772_v60 = vand.u32 15, %v706_v45  ;;  %v4108_v49 = vld [vmem:[#allocation2 + $0xb1] sm:$0xff] }
 0x11a   : > { %v723_v61 = vadd.s32 176, %v3810_v26  ;;  %v905_v62 = vand.u32 15, %v725_v42  ;;  %v715_v36 = vadd.s32 112, %v3810_v26  ;;  %v807_v40 = vand.u32 15, %v711_v3  ;;  %v4110_v42 = vld [vmem:[#allocation2 + $0xb7] sm:$0xff] }
 0x11b   : > { %3455 = vmatmul.mubr.msk.bf16.gmra.mrb[32].mxu1 %vm5229_vm2, %v3829_v57  ;;  %v1201_v57 = vld [vmem:[#allocation2 + $0xa7] sm:$0xff]  ;;  %vm4048_vm15 = vcmp.eq.s32.totalorder %v793_v53, 0  ;;  %v779_v7 = vand.u32 15, %v707_v59  ;;  %vm4060_vm0 = vcmp.eq.s32.totalorder %v772_v60, 15  ;;  %vm5285_vm8 = vcmask 64512   ;;  %v4533_v24 = vld [vmem:[#allocation2 + $0xf1] sm:$0xff] }
 0x11c   : > { %3458 = vmatprep.mubr.msk.bf16.mxu1 %vm5229_vm2, %v3867_v39  ;;  %v3997_v39 = vpack.c.bf16 %v641_v18, %v640_v14  ;;  %v1297_v41 = vsel %vm3989_vm12, 0.0, %v1201_v57  ;;  %v1537_v56 = vsel %vm4014_vm13, 0.0, %v1201_v57  ;;  %v1638_v58 = vsel %vm4018_vm14, 0.0, %v1201_v57  ;;  %v1334_v57 = vld [vmem:[#allocation2 + $0x50] sm:$0xff] }
 0x11d   : > { %1789 = vrot.lane.b32.xlu1 %v1502_v15, %s3655_s9  ;;  %1964 = vrot.lane.b32.xlu0 %v1654_v16, %s3659_s16  ;;  %v4023_v47 = vpack.c.bf16 %v1202_v28, %v1297_v41  ;;  %v1560_v63 = vpack.c.bf16 %v1202_v28, %v1537_v56  ;;  %v1662_v0 = vpack.c.bf16 %v1202_v28, %v1638_v58  ;;  %v891_v11 = vand.u32 15, %v723_v61  ;;  %v4084_v28 = vld [vmem:[#allocation2 + $0x37] sm:$0xff]  ;;  %v4116_v56 = vld [vmem:[#allocation2 + $0xbf] sm:$0xff]  ;;  %v1393_v61 = vld [vmem:[#allocation2 + $0xa9] sm:$0xff] }
 0x11e   : > { %vm4066_vm1 = vcmp.eq.s32.totalorder %v905_v62, 0  ;;  %v5274_v14 = vmov 0  ;;  %v1285_v15 = vsel %vm4048_vm15, 0.0, %v4046_v1  ;;  %v722_v18 = vadd.s32 168, %v3810_v26 }
 0x11f   : > { %v5275_v14 = vsel %vm4066_vm1, 4294967295, %v5274_v14  ;;  %v4080_v20 = vpack.c.bf16 %v4056_v6, %v1285_v15  ;;  %vm4101_vm3 = vcmp.eq.s32.totalorder %v891_v11, 0  ;;  %v835_v60 = vand.u32 15, %v715_v36  ;;  %v4142_v11 = vld [vmem:[#allocation2 + $0x6f] sm:$0xff] }
 0x120   : > { %v884_v53 = vand.u32 15, %v722_v18  ;;  %v1591_v62 = vsel %vm3975_vm10, 0.0, %v4108_v49  ;;  %v5286_v3 = vmov 0  ;;  %v729_v36 = vadd.s32 224, %v3810_v26 }
 0x121   : > { %1837 = vrot.lane.b32.xlu1 %v1552_v32, %s3657_s14  ;;  %2059 = vrot.lane.b32.xlu0 %v1714_v33, %s3660_s17  ;;  %5276 = vst [vmem:[#allocation6_spill] sm:$0xff] %v4080_v20  ;;  %v727_v32 = vadd.s32 208, %v3810_v26  ;;  %v1301_v33 = vsel %vm4066_vm1, 0.0, %v4064_v13  ;;  %v4203_v20 = vld [vmem:[#allocation2 + $0xef] sm:$0xff]  ;;  %v710_v21 = vadd.s32 72, %v3810_v26 }
 0x122   : > { %v4106_v41 = vpack.c.bf16 %v4075_v19, %v1301_v33  ;;  %v5292_v33 = vmov 0 }
 0x123   : > { %3459 = vmatmul.mubr.msk.bf16.gmra.mrb[36].mxu1 %vm5229_vm2, %v3862_v35  ;;  %v1378_v35 = vld [vmem:[#allocation2 + $0x31] sm:$0xff]  ;;  %v919_v58 = vand.u32 15, %v727_v32  ;;  %v4172_v32 = vld [vmem:[#allocation2 + $0x7f] sm:$0xff] }
 0x124   : > { %3462 = vmatprep.mubr.msk.bf16.mxu1 %vm5229_vm2, %v3923_v31  ;;  %v1575_v31 = vsel %vm3943_vm7, 0.0, %v1378_v35  ;;  %v1676_v5 = vsel %vm3838_vm4, 0.0, %v1378_v35  ;;  %v1474_v23 = vsel %vm4060_vm0, 0.0, %v1378_v35  ;;  %vm4086_vm4 = vcmp.eq.s32.totalorder %v779_v7, 0  ;;  %5281 = vst [vmem:[#allocation7_spill] sm:$0xff] %v4106_v41  ;;  %v4136_v7 = vld [vmem:[#allocation2 + $0x5f] sm:$0xff] }
 0x125   : > { %1805 = vrot.lane.b32.xlu1 %v1510_v50, %s3655_s9  ;;  %1932 = vrot.lane.b32.xlu0 %v1612_v52, %s3658_s15  ;;  %v1605_v16 = vpack.c.bf16 %v1575_v31, %v1377_v10  ;;  %v1707_v17 = vpack.c.bf16 %v1676_v5, %v1377_v10  ;;  %v1503_v45 = vpack.c.bf16 %v1474_v23, %v1377_v10  ;;  %v713_v50 = vadd.s32 96, %v3810_v26  ;;  %v4134_v5 = vld [vmem:[#allocation2 + $0x57] sm:$0xff]  ;;  %v4170_v23 = vld [vmem:[#allocation2 + $0xdf] sm:$0xff] }
 0x126   : > { %v1283_v52 = vsel %vm4086_vm4, 0.0, %v4084_v28  ;;  %v1692_v31 = vsel %vm3979_vm11, 0.0, %v4108_v49  ;;  %vm4153_vm11 = vcmp.eq.s32.totalorder %v884_v53, 15  ;;  %vm4159_vm1 = vcmp.eq.s32.totalorder %v919_v58, 0  ;;  %v1349_v53 = vld [vmem:[#allocation2 + $0xc8] sm:$0xff]  ;;  %v1350_v58 = vld [vmem:[#allocation2 + $0xd0] sm:$0xff] }
 0x127   : > { %v821_v35 = vand.u32 15, %v713_v50  ;;  %v1390_v10 = vld [vmem:[#allocation2 + $0x91] sm:$0xff] }
 0x129   : > { %1853 = vrot.lane.b32.xlu1 %v1560_v63, %s3657_s14  ;;  %1980 = vrot.lane.b32.xlu0 %v1662_v0, %s3659_s16  ;;  %v4126_v63 = vld [vmem:[#allocation2 + $0x67] sm:$0xff]  ;;  %v1299_v0 = vsel %vm4101_vm3, 0.0, %v4110_v42  ;;  %vm4146_vm6 = vcmp.eq.s32.totalorder %v821_v35, 0 }
 0x12a   : > { %v5287_v3 = vsel %vm4146_vm6, 4294967295, %v5286_v3  ;;  %v4151_v15 = vpack.c.bf16 %v4116_v56, %v1299_v0  ;;  %v4189_v35 = vld [vmem:[#allocation2 + $0xe7] sm:$0xff] }
 0x12b   : > { %3463 = vmatmul.mubr.msk.bf16.gmra.mrb[40].mxu1 %vm5229_vm2, %v3920_v30  ;;  %v4095_v30 = vld [vmem:[#allocation2 + $0x3f] sm:$0xff]  ;;  %v1545_v12 = vsel %vm4159_vm1, 0.0, %v4189_v35 }
 0x12c   : > { %3466 = vmatprep.mubr.msk.bf16.mxu1 %vm5229_vm2, %v3997_v39  ;;  %v1361_v39 = vpack.c.bf16 %v1334_v57, %v1333_v25  ;;  %v4119_v59 = vpack.c.bf16 %v4095_v30, %v1283_v52  ;;  %vm4138_vm2 = vcmp.eq.s32.totalorder %v807_v40, 0  ;;  %v4166_v25 = vld [vmem:[#allocation2 + $0x77] sm:$0xff]  ;;  %v1613_v57 = vpack.c.bf16 %v1591_v62, %v1393_v61 }
 0x12d   : > { %1918 = vrot.lane.b32.xlu1 %v1605_v16, %s3658_s15  ;;  %2045 = vrot.lane.b32.xlu0 %v1707_v17, %s3660_s17  ;;  %v4157_v17 = vld [vmem:[#allocation2 + $0xd7] sm:$0xff]  ;;  %v1289_v40 = vsel %vm4146_vm6, 0.0, %v4126_v63  ;;  %v1287_v52 = vsel %vm4138_vm2, 0.0, %v4134_v5 }
 0x12e   : > { %5282 = vst [vmem:[#allocation8_spill] sm:$0xff] %v4119_v59  ;;  %v4183_v50 = vpack.c.bf16 %v4142_v11, %v1289_v40  ;;  %v4192_v62 = vpack.c.bf16 %v4136_v7, %v1287_v52  ;;  %v1303_v0 = vsel %vm4159_vm1, 0.0, %v4157_v17  ;;  %v1490_v40 = vsel %vm4153_vm11, 0.0, %v4108_v49  ;;  %v4218_v49 = vld [vmem:[#allocation2 + $0xff] sm:$0xff] }
 0x130   : > { %5294 = vst [vmem:[#allocation9_spill] sm:$0xff] %v4183_v50  ;;  %5295 = vst [vmem:[#allocation10_spill] sm:$0xff] %v4192_v62  ;;  %v4211_v62 = vpack.c.bf16 %v4170_v23, %v1303_v0  ;;  %v5300_v50 = vmov 0  ;;  %v1369_v0 = vpack.c.bf16 %v1350_v58, %v1349_v53  ;;  %v1523_v53 = vsel %vm3965_vm9, 0.0, %v4084_v28  ;;  %v3586_v58 = vld [vmem:[%s5225_s5 + $0x18] sm:$0xff]  }
 0x131   : > { %1874 = vrot.lane.b32.xlu1 %v1361_v39, %s3656_s13  ;;  %1791 = vrot.lane.b32.xlu0 %v1503_v45, %s3655_s9  ;;  %v1715_v45 = vpack.c.bf16 %v1692_v31, %v1393_v61 }
 0x132   : > { %5296 = vst [vmem:[#allocation11_spill] sm:$0xff] %v4211_v62  ;;  %v1383_v62 = vld [vmem:[#allocation2 + $0x59] sm:$0xff] }
 0x133   : > { %3467 = vmatmul.mubr.msk.bf16.gmra.mrb[44].mxu1 %vm5285_vm8, %v3994_v27  ;;  %v3583_v27 = vld [vmem:[%s5225_s5] sm:$0xff]   ;;  %vm4174_vm8 = vcmp.eq.s32.totalorder %v835_v60, 0  ;;  %v933_v60 = vand.u32 15, %v729_v36  ;;  %v4208_v36 = vld [vmem:[#allocation2 + $0xf7] sm:$0xff] }
 0x134   : > { %v5293_v33 = vsel %vm4174_vm8, 4294967295, %v5292_v33  ;;  %3470 = vmatprep.subr.bf16.mxu0 %v3583_v27  ;;  %v1291_v31 = vsel %vm4174_vm8, 0.0, %v4166_v25  ;;  %v1648_v44 = vsel %vm4159_vm1, 0.0, %v4208_v36  ;;  %vm5339_vm1 = vcmask 64512  }
 0x135   : > { %1747 = vrot.lane.b32.xlu1 %v1361_v39, %s3653_s22  ;;  %2001 = vrot.lane.b32.xlu0 %v1361_v39, %s3654_s8  ;;  %v731_v39 = vadd.s32 240, %v3810_v26  ;;  %v4214_v59 = vpack.c.bf16 %v4172_v32, %v1291_v31  ;;  %vm4220_vm8 = vcmp.eq.s32.totalorder %v933_v60, 0  ;;  %v1511_v31 = vpack.c.bf16 %v1490_v40, %v1393_v61  ;;  %v3585_v60 = vld [vmem:[%s5225_s5 + $0x10] sm:$0xff]  }
 0x136   : > { %3471 = vmatpush3.bf16.msra.mxu0 %v3583_v27  ;;  %v3584_v27 = vld [vmem:[%s5225_s5 + $0x8] sm:$0xff]   ;;  %v1624_v61 = vsel %vm3845_vm5, 0.0, %v4084_v28  ;;  %v3587_v28 = vld [vmem:[%s5225_s5 + $0x20] ss:$0 sps:$4 sm:$0xff]   ;;  %vm5304_vm5 = vcmask 1043456  }
 0x137   : > { %v947_v52 = vand.u32 15, %v731_v39  ;;  %5297 = vst [vmem:[#allocation12_spill] sm:$0xff] %v4214_v59  ;;  %3472 = vmatprep.subr.bf16.mxu0 %v3584_v27  ;;  %v1305_v39 = vsel %vm4220_vm8, 0.0, %v4189_v35  ;;  %v1655_v40 = vpack.c.bf16 %v4095_v30, %v1624_v61  ;;  %v1347_v61 = vld [vmem:[#allocation2 + $0xb8] sm:$0xff] }
 0x139   : > { %1934 = vrot.lane.b32.xlu1 %v1613_v57, %s3658_s15  ;;  %2061 = vrot.lane.b32.xlu0 %v1715_v45, %s3660_s17  ;;  %vm4224_vm6 = vcmp.eq.s32.totalorder %v947_v52, 0  ;;  %v4232_v57 = vpack.c.bf16 %v4203_v20, %v1305_v39  ;;  %v1332_v39 = vld [vmem:[#allocation2 + $0x40] sm:$0xff] }
 0x13a   : > { %v5301_v50 = vsel %vm4224_vm6, 4294967295, %v5300_v50  ;;  %3473 = vmatpush3.bf16.msra.mxu0 %v3584_v27  ;;  %v1307_v45 = vsel %vm4224_vm6, 0.0, %v4208_v36  ;;  %v1553_v27 = vpack.c.bf16 %v4095_v30, %v1523_v53  ;;  %vm5305_vm6 = vmmov %vm5304_vm5  ;;  %v1539_v30 = vsel %vm3989_vm12, 0.0, %v4110_v42  ;;  %v1348_v53 = vld [vmem:[#allocation2 + $0xc0] sm:$0xff] }
 0x13b   : > { %5302 = vst [vmem:[#allocation13_spill] sm:$0xff] %v4232_v57  ;;  %v4241_v52 = vpack.c.bf16 %v4218_v49, %v1307_v45  ;;  %3474 = vmatprep.subr.bf16.mxu0 %v3585_v60  ;;  %v1561_v45 = vpack.c.bf16 %v4116_v56, %v1539_v30  ;;  %v1352_v57 = vld [vmem:[#allocation2 + $0xe0] sm:$0xff] }
 0x13d   : > { %5303 = vst [vmem:[#allocation14_spill] sm:$0xff] %v4241_v52  ;;  %1890 = vrot.lane.b32.xlu1 %v1369_v0, %s3656_s13  ;;  %1807 = vrot.lane.b32.xlu0 %v1511_v31, %s3655_s9  ;;  %v1360_v31 = vpack.c.bf16 %v1332_v39, %v1331_v9  ;;  %v1368_v9 = vpack.c.bf16 %v1348_v53, %v1347_v61  ;;  %v4278_v39 = vld [vmem:[#allocation2 + $0x87] sm:$0xff] }
 0x13e   : > { %3475 = vmatpush3.bf16.msra.mxu0 %v3585_v60  ;;  %v1640_v60 = vsel %vm4014_vm13, 0.0, %v4110_v42  ;;  %vm5323_vm13 = vcmask 64512  }
 0x13f   : > { %3476 = vmatprep.subr.bf16.mxu0 %v3586_v58 }
 0x141   : > { %1763 = vrot.lane.b32.xlu1 %v1369_v0, %s3653_s22  ;;  %2017 = vrot.lane.b32.xlu0 %v1369_v0, %s3654_s8  ;;  %v2701_v0 = vsel %vm5305_vm6, %v3587_v28, 0 }
 0x142   : > { %3477 = vmatpush3.bf16.msra.mxu0 %v3586_v58  ;;  %v1380_v58 = vld [vmem:[#allocation2 + $0x41] sm:$0xff] }
 0x143   : > { %3517 = vmatprep.subr.msk.bf16.mxu0 %vm5304_vm5, %v3587_v28  ;;  %v1379_v28 = vld [vmem:[#allocation2 + $0x39] sm:$0xff]  ;;  %vm2191_vm5 = vcmask 261120  }
 0x145   : > { %1966 = vrot.lane.b32.xlu1 %v1655_v40, %s3659_s16  ;;  %1839 = vrot.lane.b32.xlu0 %v1553_v27, %s3657_s14  ;;  %v708_v40 = vadd.s32 56, %v3810_v26  ;;  %v1663_v27 = vpack.c.bf16 %v4116_v56, %v1640_v60  ;;  %v724_v60 = vadd.s32 184, %v3810_v26 }
 0x146   : > { %3479 = vmatpush3.bf16.msra.mxu0 %v2701_v0  ;;  %v1678_v0 = vsel %vm3943_vm7, 0.0, %v1380_v58 }
 0x147   : > { %v786_v42 = vand.u32 15, %v708_v40  ;;  %v1708_v30 = vpack.c.bf16 %v1678_v0, %v1379_v28  ;;  %v1626_v40 = vsel %vm3965_vm9, 0.0, %v4046_v1  ;;  %v898_v0 = vand.u32 15, %v724_v60 }
 0x149   : > { %1999 = vrot.lane.b32.xlu1 %v1360_v31, %s3654_s8  ;;  %1872 = vrot.lane.b32.xlu0 %v1360_v31, %s3656_s13  ;;  %vm4296_vm6 = vcmp.eq.s32.totalorder %v786_v42, 15  ;;  %vm4316_vm7 = vcmp.eq.s32.totalorder %v898_v0, 15  ;;  %v800_v0 = vand.u32 15, %v710_v21 }
 0x14a   : > { %v1476_v53 = vsel %vm4296_vm6, 0.0, %v1380_v58 }
 0x14b   : > { %v1504_v42 = vpack.c.bf16 %v1476_v53, %v1379_v28  ;;  %vm4344_vm9 = vcmp.eq.s32.totalorder %v800_v0, 15 }
 0x14d   : > { %1745 = vrot.lane.b32.xlu1 %v1360_v31, %s3653_s22  ;;  %1855 = vrot.lane.b32.xlu0 %v1561_v45, %s3657_s14  ;;  %v1293_v31 = vsel %vm4018_vm14, 0.0, %v4278_v39  ;;  %v1577_v45 = vsel %vm4060_vm0, 0.0, %v1380_v58 }
 0x14e   : > { %v4290_v56 = vpack.c.bf16 %v4282_v43, %v1293_v31  ;;  %v1606_v61 = vpack.c.bf16 %v1577_v45, %v1379_v28  ;;  %v1656_v31 = vpack.c.bf16 %v4056_v6, %v1626_v40  ;;  %v1395_v45 = vld [vmem:[#allocation2 + $0xb9] sm:$0xff]  ;;  %v1541_v40 = vsel %vm4101_vm3, 0.0, %v4064_v13 }
 0x150   : > { %5306 = vst [vmem:[#allocation15_spill] sm:$0xff] %v4290_v56  ;;  %v1370_v56 = vpack.c.bf16 %v1352_v57, %v1351_v38 }
 0x151   : > { %1982 = vrot.lane.b32.xlu1 %v1663_v27, %s3659_s16  ;;  %1888 = vrot.lane.b32.xlu0 %v1368_v9, %s3656_s13  ;;  %v1396_v27 = vld [vmem:[#allocation2 + $0xc1] sm:$0xff] }
 0x152   : > { %v1694_v58 = vsel %vm3975_vm10, 0.0, %v1396_v27  ;;  %v1492_v60 = vsel %vm4316_vm7, 0.0, %v1396_v27 }
 0x153   : > { %v1716_v28 = vpack.c.bf16 %v1694_v58, %v1395_v45 }
 0x155   : > { %2015 = vrot.lane.b32.xlu1 %v1368_v9, %s3654_s8  ;;  %2047 = vrot.lane.b32.xlu0 %v1708_v30, %s3660_s17  ;;  %v1525_v30 = vsel %vm4086_vm4, 0.0, %v4046_v1  ;;  %v1593_v1 = vsel %vm4153_vm11, 0.0, %v1396_v27  ;;  %v1382_v27 = vld [vmem:[#allocation2 + $0x51] sm:$0xff] }
 0x156   : > { %v1614_v53 = vpack.c.bf16 %v1593_v1, %v1395_v45  ;;  %v1680_v58 = vsel %vm4060_vm0, 0.0, %v1382_v27  ;;  %v726_v1 = vadd.s32 200, %v3810_v26  ;;  %vm2125_vm0 = vcmask 130048  }
 0x159   : > { %1761 = vrot.lane.b32.xlu1 %v1368_v9, %s3653_s22  ;;  %1920 = vrot.lane.b32.xlu0 %v1606_v61, %s3658_s15  ;;  %v1554_v9 = vpack.c.bf16 %v4056_v6, %v1525_v30  ;;  %v1512_v61 = vpack.c.bf16 %v1492_v60, %v1395_v45  ;;  %v1642_v6 = vsel %vm3989_vm12, 0.0, %v4064_v13  ;;  %v1381_v30 = vld [vmem:[#allocation2 + $0x49] sm:$0xff]  ;;  %v1579_v45 = vsel %vm4296_vm6, 0.0, %v1382_v27 }
 0x15a   : > { %v1607_v13 = vpack.c.bf16 %v1579_v45, %v1381_v30  ;;  %v1338_v60 = vld [vmem:[#allocation2 + $0x70] sm:$0xff] }
 0x15d   : > { %1793 = vrot.lane.b32.xlu1 %v1504_v42, %s3655_s9  ;;  %1968 = vrot.lane.b32.xlu0 %v1656_v31, %s3659_s16  ;;  %v1562_v42 = vpack.c.bf16 %v4075_v19, %v1541_v40  ;;  %v1664_v31 = vpack.c.bf16 %v4075_v19, %v1642_v6  ;;  %v1478_v19 = vsel %vm4344_vm9, 0.0, %v1382_v27  ;;  %v912_v40 = vand.u32 15, %v726_v1  ;;  %v1397_v27 = vld [vmem:[#allocation2 + $0xc9] sm:$0xff] }
 0x15f   : > { %vm4367_vm10 = vcmp.eq.s32.totalorder %v912_v40, 15  ;;  %v1628_v40 = vsel %vm4086_vm4, 0.0, %v4134_v5  ;;  %vm5245_vm4 = vcmask 195584  }
 0x161   : > { %1841 = vrot.lane.b32.xlu1 %v1554_v9, %s3657_s14  ;;  %2063 = vrot.lane.b32.xlu0 %v1716_v28, %s3660_s17  ;;  %v1709_v9 = vpack.c.bf16 %v1680_v58, %v1381_v30  ;;  %v1337_v28 = vld [vmem:[#allocation2 + $0x68] sm:$0xff] }
 0x162   : > { %v1363_v21 = vpack.c.bf16 %v1338_v60, %v1337_v28  ;;  %v1353_v28 = vld [vmem:[#allocation2 + $0xe8] sm:$0xff]  ;;  %v1354_v60 = vld [vmem:[#allocation2 + $0xf0] sm:$0xff] }
 0x165   : > { %1809 = vrot.lane.b32.xlu1 %v1512_v61, %s3655_s9  ;;  %1936 = vrot.lane.b32.xlu0 %v1614_v53, %s3658_s15  ;;  %v1505_v61 = vpack.c.bf16 %v1478_v19, %v1381_v30  ;;  %v1398_v53 = vld [vmem:[#allocation2 + $0xd1] sm:$0xff] }
 0x166   : > { %v1494_v16 = vsel %vm4367_vm10, 0.0, %v1398_v53 }
 0x169   : > { %1857 = vrot.lane.b32.xlu1 %v1562_v42, %s3657_s14  ;;  %1984 = vrot.lane.b32.xlu0 %v1664_v31, %s3659_s16  ;;  %v1595_v42 = vsel %vm4316_vm7, 0.0, %v1398_v53  ;;  %v1696_v31 = vsel %vm4153_vm11, 0.0, %v1398_v53  ;;  %vm5318_vm11 = vnez %v5275_v14 }
 0x16d   : > { %1922 = vrot.lane.b32.xlu1 %v1607_v13, %s3658_s15  ;;  %2049 = vrot.lane.b32.xlu0 %v1709_v9, %s3660_s17  ;;  %v1615_v13 = vpack.c.bf16 %v1595_v42, %v1397_v27  ;;  %v1717_v9 = vpack.c.bf16 %v1696_v31, %v1397_v27  ;;  %v1657_v31 = vpack.c.bf16 %v4136_v7, %v1628_v40 }
 0x171   : > { %1878 = vrot.lane.b32.xlu1 %v1363_v21, %s3656_s13  ;;  %1795 = vrot.lane.b32.xlu0 %v1505_v61, %s3655_s9  ;;  %v1513_v61 = vpack.c.bf16 %v1494_v16, %v1397_v27  ;;  %v1527_v27 = vsel %vm4048_vm15, 0.0, %v4134_v5  ;;  %v1644_v5 = vsel %vm4101_vm3, 0.0, %v4157_v17  ;;  %vm5319_vm3 = vnez %v5253_v55 }
 0x172   : > { %v1555_v16 = vpack.c.bf16 %v4136_v7, %v1527_v27  ;;  %v712_v7 = vadd.s32 88, %v3810_v26  ;;  %v728_v55 = vadd.s32 216, %v3810_v26 }
 0x173   : > { %v4357_v6 = vpop.permute.xlu0 %1997  ;;  %v4359_v0 = vpop.permute.xlu1 %1787 }
 0x175   : > { %1751 = vrot.lane.b32.xlu1 %v1363_v21, %s3653_s22  ;;  %2005 = vrot.lane.b32.xlu0 %v1363_v21, %s3654_s8  ;;  %v4383_v21 = vpack.c.bf16 %v1354_v60, %v1353_v28 }
 0x177   : > { %v4371_v45 = vpop.permute.xlu0 %2013  ;;  %v4373_v58 = vpop.permute.xlu1 %1870 }
 0x178   : > { %5315 = vst [vmem:[#allocation16_spill] sm:$0xff] %v4371_v45  ;;  %v1182_v45 = vld [vmem:[#allocation2 + $0xf] sm:$0xff] }
 0x179   : > { %1938 = vrot.lane.b32.xlu1 %v1615_v13, %s3658_s15  ;;  %2065 = vrot.lane.b32.xlu0 %v1717_v9, %s3660_s17  ;;  %v1335_v13 = vld [vmem:[#allocation2 + $0x58] sm:$0xff]  ;;  %v1336_v9 = vld [vmem:[#allocation2 + $0x60] sm:$0xff] }
 0x17a   : > { %v1362_v60 = vpack.c.bf16 %v1336_v9, %v1335_v13  ;;  %v1181_v13 = vld [vmem:[#allocation2 + $0x7] sm:$0xff] }
 0x17b   : > { %v4379_v19 = vpop.permute.xlu1 %1743  ;;  %v4381_v1 = vpop.permute.xlu0 %1741 }
 0x17d   : > { %1894 = vrot.lane.b32.xlu1 %v4383_v21, %s3656_s13  ;;  %1811 = vrot.lane.b32.xlu0 %v1513_v61, %s3655_s9 }
 0x17f   : > { %v4391_v53 = vpop.permute.xlu1 %1886  ;;  %v4393_v42 = vpop.permute.xlu0 %1835 }
 0x181   : > { %1970 = vrot.lane.b32.xlu1 %v1657_v31, %s3659_s16  ;;  %2021 = vrot.lane.b32.xlu0 %v4383_v21, %s3654_s8  ;;  %v1543_v31 = vsel %vm5318_vm11, 0.0, %v4157_v17  ;;  %v1384_v17 = vld [vmem:[#allocation2 + $0x61] sm:$0xff] }
 0x182   : > { %v1563_v52 = vpack.c.bf16 %v4170_v23, %v1543_v31 }
 0x183   : > { %v4402_v29 = vpop.permute.xlu1 %1759  ;;  %v1869_v28 = vpop.permute.xlu0 %1868 }
 0x185   : > { %2003 = vrot.lane.b32.xlu1 %v1362_v60, %s3654_s8  ;;  %1843 = vrot.lane.b32.xlu0 %v1555_v16, %s3657_s14  ;;  %v1665_v16 = vpack.c.bf16 %v4170_v23, %v1644_v5  ;;  %v1682_v23 = vsel %vm4296_vm6, 0.0, %v1384_v17  ;;  %vm5242_vm6 = vcmask 326656  }
 0x186   : > { %v1710_v57 = vpack.c.bf16 %v1682_v23, %v1383_v62 }
 0x187   : > { %v4407_v61 = vpop.permute.xlu1 %2011  ;;  %v4409_v40 = vpop.permute.xlu0 %1884 }
 0x188   : > { %5316 = vst [vmem:[#allocation17_spill] sm:$0xff] %v4407_v61  ;;  %5317 = vst [vmem:[#allocation18_spill] sm:$0xff] %v4409_v40  ;;  %v814_v61 = vand.u32 15, %v712_v7 }
 0x189   : > { %1749 = vrot.lane.b32.xlu1 %v1362_v60, %s3653_s22  ;;  %1876 = vrot.lane.b32.xlu0 %v1362_v60, %s3656_s13  ;;  %v1277_v60 = vsel %vm5319_vm3, 0.0, %v1181_v13  ;;  %vm5243_vm3 = vcmask 392192  }
 0x18a   : > { %v1309_v5 = vpack.c.bf16 %v1182_v45, %v1277_v60  ;;  %vm4434_vm12 = vcmp.eq.s32.totalorder %v814_v61, 15  ;;  %v1581_v45 = vsel %vm4344_vm9, 0.0, %v1384_v17  ;;  %v926_v61 = vand.u32 15, %v728_v55 }
 0x18b   : > { %v4420_v9 = vpop.permute.xlu1 %1757  ;;  %v1917_v27 = vpop.permute.xlu0 %1916  ;;  %v1480_v51 = vsel %vm4434_vm12, 0.0, %v1384_v17  ;;  %v1608_v23 = vpack.c.bf16 %v1581_v45, %v1383_v62 }
 0x18c   : > { %v2079_v13 = vsel %vm5323_vm13, %v1309_v5, %v4352_v8  ;;  %v1506_v60 = vpack.c.bf16 %v1480_v51, %v1383_v62  ;;  %v1529_v8 = vsel %vm4138_vm2, 0.0, %v4126_v63  ;;  %vm4467_vm13 = vcmp.eq.s32.totalorder %v926_v61, 15 }
 0x18d   : > { %1986 = vrot.lane.b32.xlu1 %v1665_v16, %s3659_s16  ;;  %1859 = vrot.lane.b32.xlu0 %v1563_v52, %s3657_s14  ;;  %v2127_v17 = vsel %vm2125_vm0, %v2079_v13, %v4359_v0  ;;  %v1400_v0 = vld [vmem:[#allocation2 + $0xe1] sm:$0xff]  ;;  %v1399_v13 = vld [vmem:[#allocation2 + $0xd9] sm:$0xff]  ;;  %v2106_v18 = vsel %vm5339_vm1, %v4034_v54, %v4420_v9 }
 0x18e   : > { %v2160_v5 = vsel %vm5245_vm4, %v2127_v17, %v4393_v42  ;;  %v1496_v61 = vsel %vm4467_vm13, 0.0, %v1400_v0  ;;  %v4625_v52 = vld [vmem:[%s5224_s4] ss:$0 sm:$0xff] }
 0x18f   : > { %v4428_v59 = vpop.permute.xlu1 %1789  ;;  %v1965_v40 = vpop.permute.xlu0 %1964  ;;  %v2193_v55 = vsel %vm2191_vm5, %v2160_v5, %v1869_v28  ;;  %v1698_v28 = vsel %vm4316_vm7, 0.0, %v1400_v0 }
 0x191   : > { %2019 = vrot.lane.b32.xlu1 %v1370_v56, %s3654_s8  ;;  %1892 = vrot.lane.b32.xlu0 %v1370_v56, %s3656_s13 }
 0x193   : > { %v4439_v31 = vpop.permute.xlu1 %1837  ;;  %v4441_v7 = vpop.permute.xlu0 %2059 }
 0x194   : > { %5322 = vst [vmem:[#allocation19_spill] sm:$0xff] %v4441_v7  ;;  %v1389_v7 = vld [vmem:[#allocation2 + $0x89] sm:$0xff] }
 0x195   : > { %1765 = vrot.lane.b32.xlu1 %v1370_v56, %s3653_s22  ;;  %2051 = vrot.lane.b32.xlu0 %v1710_v57, %s3660_s17  ;;  %v1630_v56 = vsel %vm4048_vm15, 0.0, %v4126_v63  ;;  %v2226_v57 = vsel %vm5242_vm6, %v2193_v55, %v1917_v27  ;;  %v1556_v63 = vpack.c.bf16 %v4142_v11, %v1529_v8  ;;  %vm2290_vm15 = vcmask 457728  }
 0x196   : > { %v1658_v42 = vpack.c.bf16 %v4142_v11, %v1630_v56  ;;  %v2259_v45 = vsel %vm5243_vm3, %v2226_v57, %v1965_v40  ;;  %vm2323_vm6 = vcmask 523264   ;;  %v1514_v40 = vpack.c.bf16 %v1496_v61, %v1399_v13  ;;  %v1386_v56 = vld [vmem:[#allocation2 + $0x71] sm:$0xff] }
 0x197   : > { %v4451_v16 = vpop.permute.xlu1 %1805  ;;  %v4453_v38 = vpop.permute.xlu0 %1932  ;;  %v2292_v11 = vsel %vm2290_vm15, %v2259_v45, %v4357_v6  ;;  %vm5244_vm3 = vcmask 588800   ;;  %v1597_v8 = vsel %vm4367_vm10, 0.0, %v1400_v0  ;;  %v1564_v55 = vpack.c.bf16 %v4203_v20, %v1545_v12 }
 0x198   : > { %5324 = vst [vmem:[#allocation20_spill] sm:$0xff] %v4453_v38  ;;  %v1616_v57 = vpack.c.bf16 %v1597_v8, %v1399_v13  ;;  %v1583_v0 = vsel %vm4434_vm12, 0.0, %v1386_v56  ;;  %v1646_v45 = vsel %vm5318_vm11, 0.0, %v4189_v35  ;;  %vm5333_vm11 = vnez %v5257_v4 }
 0x199   : > { %1797 = vrot.lane.b32.xlu1 %v1506_v60, %s3655_s9  ;;  %1924 = vrot.lane.b32.xlu0 %v1608_v23, %s3658_s15  ;;  %v1718_v23 = vpack.c.bf16 %v1698_v28, %v1399_v13  ;;  %v1666_v13 = vpack.c.bf16 %v4203_v20, %v1646_v45  ;;  %v4539_v45 = vld [vmem:[#allocation2 + $0xe9] sm:$0xff] }
 0x19b   : > { %v4473_v51 = vpop.permute.xlu1 %1853  ;;  %v4475_v2 = vpop.permute.xlu0 %1980 }
 0x19c   : > { %5327 = vst [vmem:[#allocation21_spill] sm:$0xff] %v4475_v2 }
 0x19d   : > { %1845 = vrot.lane.b32.xlu1 %v1556_v63, %s3657_s14  ;;  %1972 = vrot.lane.b32.xlu0 %v1658_v42, %s3659_s16  ;;  %v714_v63 = vadd.s32 104, %v3810_v26  ;;  %v1385_v42 = vld [vmem:[#allocation2 + $0x69] sm:$0xff] }
 0x19f   : > { %v4486_v27 = vpop.permute.xlu1 %1918  ;;  %v2046_v60 = vpop.permute.xlu0 %2045 }
 0x1a0   : > { %v2325_v17 = vsel %vm2323_vm6, %v2292_v11, %v2046_v60  ;;  %v1609_v11 = vpack.c.bf16 %v1583_v0, %v1385_v42  ;;  %v828_v60 = vand.u32 15, %v714_v63 }
 0x1a1   : > { %1813 = vrot.lane.b32.xlu1 %v1514_v40, %s3655_s9  ;;  %2067 = vrot.lane.b32.xlu0 %v1718_v23, %s3660_s17  ;;  %v1341_v40 = vld [vmem:[#allocation2 + $0x88] sm:$0xff]  ;;  %v1342_v23 = vld [vmem:[#allocation2 + $0x90] sm:$0xff] }
 0x1a2   : > { %3480 = vmatprep.mubr.msk.bf16.mxu0 %vm5244_vm3, %v2325_v17  ;;  %v1684_v17 = vsel %vm4344_vm9, 0.0, %v1386_v56  ;;  %v1365_v12 = vpack.c.bf16 %v1342_v23, %v1341_v40  ;;  %vm4525_vm7 = vcmp.eq.s32.totalorder %v828_v60, 15  ;;  %vm5331_vm9 = vnez %v5287_v3 }
 0x1a3   : > { %v4499_v6 = vpop.permute.xlu1 %1874  ;;  %v4501_v5 = vpop.permute.xlu0 %1791  ;;  %v1711_v8 = vpack.c.bf16 %v1684_v17, %v1385_v42  ;;  %v1482_v20 = vsel %vm4525_vm7, 0.0, %v1386_v56  ;;  %v1531_v40 = vsel %vm5331_vm9, 0.0, %v4166_v25  ;;  %vm5334_vm3 = vnez %v5263_v22 }
 0x1a4   : > { %v1507_v0 = vpack.c.bf16 %v1482_v20, %v1385_v42  ;;  %v1632_v42 = vsel %vm4138_vm2, 0.0, %v4166_v25  ;;  %v1557_v20 = vpack.c.bf16 %v4172_v32, %v1531_v40  ;;  %vm5332_vm2 = vcmask 64512  }
 0x1a5   : > { %1861 = vrot.lane.b32.xlu1 %v1564_v55, %s3657_s14  ;;  %1940 = vrot.lane.b32.xlu0 %v1616_v57, %s3658_s15 }
 0x1a7   : > { %v4512_v61 = vpop.permute.xlu1 %1747  ;;  %v4514_v28 = vpop.permute.xlu0 %2001 }
 0x1a9   : > { %1926 = vrot.lane.b32.xlu1 %v1609_v11, %s3658_s15  ;;  %1988 = vrot.lane.b32.xlu0 %v1666_v13, %s3659_s16  ;;  %v1599_v11 = vsel %vm4467_vm13, 0.0, %v4533_v24 }
 0x1aa   : > { %v1617_v60 = vpack.c.bf16 %v1599_v11, %v4539_v45  ;;  %v1340_v11 = vld [vmem:[#allocation2 + $0x80] sm:$0xff] }
 0x1ab   : > { %v4521_v14 = vpop.permute.xlu1 %1934  ;;  %v4523_v35 = vpop.permute.xlu0 %2061 }
 0x1ac   : > { %5328 = vst [vmem:[#allocation22_spill] sm:$0xff] %v4523_v35 }
 0x1ad   : > { %1882 = vrot.lane.b32.xlu1 %v1365_v12, %s3656_s13  ;;  %2053 = vrot.lane.b32.xlu0 %v1711_v8, %s3660_s17  ;;  %v1659_v8 = vpack.c.bf16 %v4172_v32, %v1632_v42  ;;  %v2082_v32 = vsel %vm5332_vm2, %v3879_v46, %v4381_v1  ;;  %vm5335_vm2 = vnez %v5293_v33  ;;  %v1700_v33 = vsel %vm4367_vm10, 0.0, %v4533_v24  ;;  %vm5345_vm10 = vmmov %vm5339_vm1 }
 0x1ae   : > { %v1636_v22 = vsel %vm5335_vm2, 0.0, %v4004_v37 }
 0x1af   : > { %v4535_v57 = vpop.permute.xlu1 %1890  ;;  %v4537_v63 = vpop.permute.xlu0 %1807 }
 0x1b1   : > { %1755 = vrot.lane.b32.xlu1 %v1365_v12, %s3653_s22  ;;  %1799 = vrot.lane.b32.xlu0 %v1507_v0, %s3655_s9  ;;  %v1339_v0 = vld [vmem:[#allocation2 + $0x78] sm:$0xff] }
 0x1b3   : > { %v4546_v56 = vpop.permute.xlu1 %1763  ;;  %v4548_v13 = vpop.permute.xlu0 %2017 }
 0x1b5   : > { %1942 = vrot.lane.b32.xlu1 %v1617_v60, %s3658_s15  ;;  %2009 = vrot.lane.b32.xlu0 %v1365_v12, %s3654_s8  ;;  %v1364_v60 = vpack.c.bf16 %v1340_v11, %v1339_v0  ;;  %v1688_v12 = vsel %vm4525_vm7, 0.0, %v1390_v10  ;;  %v1587_v0 = vsel %vm5333_vm11, 0.0, %v1390_v10  ;;  %v1486_v11 = vsel %vm5334_vm3, 0.0, %v1390_v10 }
 0x1b6   : > { %v1509_v38 = vpack.c.bf16 %v1486_v11, %v1389_v7  ;;  %vm5336_vm3 = vcmask 326656  }
 0x1b7   : > { %v1967_v23 = vpop.permute.xlu1 %1966  ;;  %v4559_v17 = vpop.permute.xlu0 %1839 }
 0x1b9   : > { %1974 = vrot.lane.b32.xlu1 %v1659_v8, %s3659_s16  ;;  %1847 = vrot.lane.b32.xlu0 %v1557_v20, %s3657_s14  ;;  %v1713_v8 = vpack.c.bf16 %v1688_v12, %v1389_v7  ;;  %v2129_v20 = vsel %vm2125_vm0, %v2082_v32, %v4428_v59  ;;  %v1611_v12 = vpack.c.bf16 %v1587_v0, %v1389_v7 }
 0x1ba   : > { %v2162_v2 = vsel %vm5245_vm4, %v2129_v20, %v4439_v31  ;;  %v1535_v31 = vsel %vm4018_vm14, 0.0, %v4004_v37  ;;  %vm5337_vm4 = vcmask 392192   ;;  %vm5338_vm14 = vcmask 588800  }
 0x1bb   : > { %v2000_v35 = vpop.permute.xlu1 %1999  ;;  %v4565_v25 = vpop.permute.xlu0 %1872  ;;  %v2195_v59 = vsel %vm2191_vm5, %v2162_v2, %v4373_v58  ;;  %v1559_v20 = vpack.c.bf16 %v4025_v48, %v1535_v31  ;;  %v1667_v0 = vpack.c.bf16 %v4218_v49, %v1648_v44 }
 0x1bc   : > { %v2228_v10 = vsel %vm5336_vm3, %v2195_v59, %v4486_v27  ;;  %v1387_v27 = vld [vmem:[#allocation2 + $0x79] sm:$0xff] }
 0x1bd   : > { %2007 = vrot.lane.b32.xlu1 %v1364_v60, %s3654_s8  ;;  %1880 = vrot.lane.b32.xlu0 %v1364_v60, %s3656_s13  ;;  %v2261_v7 = vsel %vm5337_vm4, %v2228_v10, %v1967_v23  ;;  %vm5341_vm4 = vmmov %vm5336_vm3 }
 0x1be   : > { %v2294_v58 = vsel %vm2290_vm15, %v2261_v7, %v2000_v35  ;;  %v730_v35 = vadd.s32 232, %v3810_v26  ;;  %vm5348_vm3 = vmmov %vm5339_vm1 }
 0x1bf   : > { %v4574_v42 = vpop.permute.xlu1 %1745  ;;  %v4576_v40 = vpop.permute.xlu0 %1855 }
 0x1c0   : > { %v940_v31 = vand.u32 15, %v730_v35 }
 0x1c1   : > { %1753 = vrot.lane.b32.xlu1 %v1364_v60, %s3653_s22  ;;  %2057 = vrot.lane.b32.xlu0 %v1713_v8, %s3660_s17  ;;  %v1388_v60 = vld [vmem:[#allocation2 + $0x81] sm:$0xff]  ;;  %v1661_v8 = vpack.c.bf16 %v4025_v48, %v1636_v22  ;;  %v2145_v22 = vsel %vm2125_vm0, %v2106_v18, %v4451_v16  ;;  %v1533_v16 = vsel %vm5335_vm2, 0.0, %v4278_v39  ;;  %vm5347_vm2 = vmmov %vm5339_vm1 }
 0x1c2   : > { %v1585_v59 = vsel %vm4525_vm7, 0.0, %v1388_v60  ;;  %vm4661_vm7 = vcmp.eq.s32.totalorder %v940_v31, 15  ;;  %v2109_v31 = vsel %vm5345_vm10, %v4023_v47, %v4402_v29  ;;  %v732_v47 = vadd.s32 248, %v3810_v26 }
 0x1c3   : > { %v1983_v46 = vpop.permute.xlu1 %1982  ;;  %v4588_v1 = vpop.permute.xlu0 %1888  ;;  %v1610_v55 = vpack.c.bf16 %v1585_v59, %v1387_v27 }
 0x1c5   : > { %1930 = vrot.lane.b32.xlu1 %v1611_v12, %s3658_s15  ;;  %1803 = vrot.lane.b32.xlu0 %v1509_v38, %s3655_s9  ;;  %v1686_v38 = vsel %vm4434_vm12, 0.0, %v1388_v60  ;;  %v1484_v12 = vsel %vm5333_vm11, 0.0, %v1388_v60  ;;  %vm5340_vm12 = vcmask 195584  }
 0x1c6   : > { %v1712_v11 = vpack.c.bf16 %v1686_v38, %v1387_v27  ;;  %v2178_v54 = vsel %vm5340_vm12, %v2145_v22, %v4473_v51  ;;  %v1634_v51 = vsel %vm5331_vm9, 0.0, %v4278_v39  ;;  %v1558_v39 = vpack.c.bf16 %v4282_v43, %v1533_v16  ;;  %v1355_v22 = vld [vmem:[#allocation2 + $0xf8] sm:$0xff]  ;;  %vm5346_vm11 = vmmov %vm5340_vm12 }
 0x1c7   : > { %v2016_v2 = vpop.permute.xlu1 %2015  ;;  %v2048_v32 = vpop.permute.xlu0 %2047  ;;  %vm5344_vm9 = vcmask 392192   ;;  %v1660_v30 = vpack.c.bf16 %v4282_v43, %v1634_v51  ;;  %v2147_v43 = vsel %vm2125_vm0, %v2109_v31, %v4537_v63  ;;  %v2085_v51 = vsel %vm5348_vm3, %v4001_v34, %v4379_v19  ;;  %vm5350_vm1 = vmmov %vm5346_vm11 }
 0x1c8   : > { %v2327_v37 = vsel %vm2323_vm6, %v2294_v58, %v2048_v32  ;;  %v1508_v58 = vpack.c.bf16 %v1484_v12, %v1387_v27  ;;  %v2180_v29 = vsel %vm5346_vm11, %v2147_v43, %v4576_v40  ;;  %vm5351_vm12 = vmmov %vm5341_vm4  ;;  %v1568_v43 = vld [vmem:[#allocation2 + $0x110] sm:$0xff] }
 0x1c9   : > { %1978 = vrot.lane.b32.xlu1 %v1661_v8, %s3659_s16  ;;  %1851 = vrot.lane.b32.xlu0 %v1559_v20, %s3657_s14  ;;  %v2211_v20 = vsel %vm2191_vm5, %v2178_v54, %v4391_v53  ;;  %v1356_v54 = vld [vmem:[#allocation2 + $0x100] sm:$0xff]  ;;  %vm5353_vm10 = vmmov %vm5344_vm9 }
 0x1ca   : > { %3481 = vmatmul.mubr.msk.bf16.vlgmr.msra.gmra.mrb[16].mxu0 %vm5338_vm14, %v2327_v37  ;;  %v2244_v27 = vsel %vm5341_vm4, %v2211_v20, %v4521_v14  ;;  %vm5349_vm14 = vmmov %vm5341_vm4 }
 0x1cb   : > { %v1762_v23 = vpop.permute.xlu1 %1761  ;;  %v4616_v48 = vpop.permute.xlu0 %1920  ;;  %v2277_v38 = vsel %vm5344_vm9, %v2244_v27, %v1983_v46  ;;  %vm5352_vm4 = vmmov %vm5350_vm1 }
 0x1cc   : > { %v2310_v18 = vsel %vm2290_vm15, %v2277_v38, %v2016_v2 }
 0x1cd   : > { %1990 = vrot.lane.b32.xlu1 %v1667_v0, %s3659_s16  ;;  %2055 = vrot.lane.b32.xlu0 %v1712_v11, %s3660_s17 }
 0x1ce   : > { %v3440_v9 = vpop.f32.mrb[16].mxu1 }
 0x1cf   : > { %v2467_v10 = vadd.f32 %v3440_v9, %v4625_v52  ;;  %v2458_v7 = vpop.f32.mrb[17].mxu1  ;;  %v4638_v4 = vpop.permute.xlu1 %1793  ;;  %v1719_v9 = vpack.c.bf16 %v1700_v33, %v4539_v45 }
 0x1d0   : > { %v2459_v60 = vadd.f32 %v4625_v52, %v2458_v7  ;;  %v4644_v32 = vpop.permute.xlu0 %1968  ;;  %v3441_v8 = vpop.f32.mrb[18].mxu1  ;;  %v1498_v7 = vsel %vm4661_vm7, 0.0, %v4533_v24  ;;  %v2213_v24 = vsel %vm2191_vm5, %v2180_v29, %v4588_v1 }
 0x1d1   : > { %v2470_v37 = vadd.f32 %v3441_v8, %v4625_v52  ;;  %v2461_v44 = vpop.f32.mrb[19].mxu1  ;;  %1801 = vrot.lane.b32.xlu1 %v1508_v58, %s3655_s9  ;;  %1928 = vrot.lane.b32.xlu0 %v1610_v55, %s3658_s15  ;;  %v2587_v35 = vmax.f32 %v2467_v10, 0.0  ;;  %v2112_v55 = vsel %vm5347_vm2, %v4151_v15, %v1762_v23  ;;  %v2131_v15 = vsel %vm2125_vm0, %v2085_v51, %v4501_v5 }
 0x1d2   : > { %v2462_v3 = vadd.f32 %v4625_v52, %v2461_v44  ;;  %v2585_v12 = vmax.f32 %v2459_v60, 0.0  ;;  %v4693_v60 = vpack.c.bf16 %v1356_v54, %v1355_v22  ;;  %v2164_v44 = vsel %vm5350_vm1, %v2131_v15, %v4559_v17  ;;  %vm5361_vm1 = vmmov %vm5348_vm3 }
 0x1d3   : > { %v2588_v0 = vmax.f32 %v2470_v37, 0.0  ;;  %v4666_v11 = vpop.permute.xlu1 %1841  ;;  %v2197_v5 = vsel %vm2191_vm5, %v2164_v44, %v4565_v25  ;;  %v1547_v17 = vsel %vm4220_vm8, 0.0, %v4208_v36  ;;  %vm5356_vm2 = vcmask 588800  }
 0x1d4   : > { %v2586_v14 = vmax.f32 %v2462_v3, 0.0  ;;  %v2064_v59 = vpop.permute.xlu0 %2063  ;;  %v1565_v36 = vpack.c.bf16 %v4218_v49, %v1547_v17  ;;  %v1621_v17 = vld [vmem:[#allocation2 + $0x11f] sm:$0xff] }
 0x1d5   : > { %v4674_v46 = vpack.c.bf16 %v2588_v0, %v2587_v35  ;;  %v4677_v10 = vsel %vm2323_vm6, %v2310_v18, %v2064_v59  ;;  %1849 = vrot.lane.b32.xlu1 %v1558_v39, %s3657_s14  ;;  %1976 = vrot.lane.b32.xlu0 %v1660_v30, %s3659_s16  ;;  %v1515_v39 = vpack.c.bf16 %v1498_v7, %v4539_v45 }
 0x1d6   : > { %v4683_v2 = vpack.c.bf16 %v2586_v14, %v2585_v12  ;;  %v3444_v58 = vpop.f32.mrb[20].mxu1  ;;  %v2230_v35 = vsel %vm5351_vm12, %v2197_v5, %v4616_v48  ;;  %v954_v48 = vand.u32 15, %v732_v47 }
 0x1d7   : > { %v1810_v16 = vpop.permute.xlu1 %1809  ;;  %v2483_v63 = vadd.f32 %v3444_v58, %v4625_v52  ;;  %v2474_v8 = vpop.f32.mrb[21].mxu1  ;;  %v2263_v12 = vsel %vm5344_vm9, %v2230_v35, %v4644_v32 }
 0x1d8   : > { %v2149_v26 = vsel %vm2125_vm0, %v2112_v55, %v1810_v16  ;;  %v1937_v20 = vpop.permute.xlu0 %1936  ;;  %v2475_v40 = vadd.f32 %v4625_v52, %v2474_v8  ;;  %v3445_v37 = vpop.f32.mrb[22].mxu1  ;;  %vm4748_vm11 = vcmp.eq.s32.totalorder %v954_v48, 15 }
 0x1d9   : > { %v2246_v23 = vsel %vm5349_vm14, %v2213_v24, %v1937_v20  ;;  %2023 = vrot.lane.b32.xlu1 %v4693_v60, %s3654_s8  ;;  %2069 = vrot.lane.b32.xlu0 %v1719_v9, %s3660_s17  ;;  %v2591_v34 = vmax.f32 %v2483_v63, 0.0  ;;  %v2486_v19 = vadd.f32 %v3445_v37, %v4625_v52  ;;  %v2477_v1 = vpop.f32.mrb[23].mxu1  ;;  %v2296_v9 = vsel %vm2290_vm15, %v2263_v12, %v4514_v28  ;;  %v4752_v28 = vld [vmem:[#allocation2 + $0x111] sm:$0xff]  ;;  %v4760_v37 = vld [vmem:[#allocation2 + $0x109] sm:$0xff]  ;;  %v1403_v12 = vld [vmem:[#allocation2 + $0xf9] sm:$0xff] }
 0x1da   : > { %v2589_v33 = vmax.f32 %v2475_v40, 0.0  ;;  %v2478_v27 = vadd.f32 %v4625_v52, %v2477_v1  ;;  %v1603_v15 = vsel %vm4748_vm11, 0.0, %v4752_v28  ;;  %vm5358_vm14 = vnez %v5301_v50 }
 0x1db   : > { %v1858_v3 = vpop.permute.xlu1 %1857  ;;  %v2592_v38 = vmax.f32 %v2486_v19, 0.0  ;;  %v1404_v19 = vld [vmem:[#allocation2 + $0x101] sm:$0xff] }
 0x1dc   : > { %v4719_v0 = vsel %vm5352_vm4, %v2149_v26, %v1858_v3  ;;  %v1985_v30 = vpop.permute.xlu0 %1984  ;;  %v2590_v18 = vmax.f32 %v2478_v27, 0.0  ;;  %v1619_v27 = vpack.c.bf16 %v1603_v15, %v4760_v37  ;;  %v1702_v48 = vsel %vm4467_vm13, 0.0, %v1404_v19  ;;  %vm5359_vm13 = vmmov %vm5351_vm12 }
 0x1dd   : > { %v4727_v25 = vsel %vm5353_vm10, %v2246_v23, %v1985_v30  ;;  %1767 = vrot.lane.b32.xlu1 %v4383_v21, %s3653_s22  ;;  %1815 = vrot.lane.b32.xlu0 %v1515_v39, %s3655_s9  ;;  %v4732_v45 = vpack.c.bf16 %v2592_v38, %v2591_v34  ;;  %v1567_v21 = vld [vmem:[#allocation2 + $0x108] sm:$0xff]  ;;  %v1620_v34 = vld [vmem:[#allocation2 + $0x117] sm:$0xff]  ;;  %vm5365_vm12 = vmmov %vm5352_vm4 }
 0x1de   : > { %v4734_v14 = vpack.c.bf16 %v2590_v18, %v2589_v33  ;;  %v3448_v59 = vpop.f32.mrb[24].mxu1  ;;  %v1569_v24 = vpack.c.bf16 %v1568_v43, %v1567_v21  ;;  %v5357_v39 = vld [vmem:[#allocation9_spill] sm:$0xff]  ;;  %v1652_v18 = vsel %vm5358_vm14, 0.0, %v1620_v34  ;;  %v2215_v21 = vsel %vm2191_vm5, %v4719_v0, %v4535_v57 }
 0x1df   : > { %v4736_v22 = vpop.permute.xlu1 %1922  ;;  %v2499_v32 = vadd.f32 %v3448_v59, %v4625_v52  ;;  %v2490_v54 = vpop.f32.mrb[25].mxu1  ;;  %v1517_v0 = vld [vmem:[#allocation2 + $0x107] sm:$0xff] }
 0x1e0   : > { %v2050_v31 = vpop.permute.xlu0 %2049  ;;  %v2491_v7 = vadd.f32 %v4625_v52, %v2490_v54  ;;  %v3449_v58 = vpop.f32.mrb[26].mxu1 }
 0x1e1   : > { %v2329_v47 = vsel %vm2323_vm6, %v2296_v9, %v2050_v31  ;;  %1769 = vrot.lane.b32.xlu1 %v4693_v60, %s3653_s22  ;;  %1863 = vrot.lane.b32.xlu0 %v1565_v36, %s3657_s14  ;;  %v2595_v49 = vmax.f32 %v2499_v32, 0.0  ;;  %v2502_v29 = vadd.f32 %v3449_v58, %v4625_v52  ;;  %v2493_v55 = vpop.f32.mrb[27].mxu1  ;;  %v1500_v31 = vsel %vm4748_vm11, 0.0, %v1404_v19  ;;  %s3594_s22 = scalar_lea.vmem %s3593_s29, 4096 }
 0x1e2   : > { %3484 = vmatprep.mubr.msk.bf16.mxu0 %vm5356_vm2, %v2329_v47  ;;  %v2593_v63 = vmax.f32 %v2491_v7, 0.0  ;;  %v2494_v8 = vadd.f32 %v4625_v52, %v2493_v55  ;;  %v1669_v7 = vpack.c.bf16 %v1621_v17, %v1652_v18  ;;  %v1720_v58 = vpack.c.bf16 %v1702_v48, %v1403_v12  ;;  %v1671_v48 = vld [vmem:[#allocation2 + $0x120] sm:$0xff] }
 0x1e3   : > { %v4756_v51 = vpop.permute.xlu1 %1878  ;;  %v2596_v26 = vmax.f32 %v2502_v29, 0.0  ;;  %v1516_v15 = vpack.c.bf16 %v1500_v31, %v1403_v12 }
 0x1e4   : > { %v4758_v20 = vpop.permute.xlu0 %1795  ;;  %v2594_v40 = vmax.f32 %v2494_v8, 0.0 }
 0x1e5   : > { %1898 = vrot.lane.b32.xlu1 %v1569_v24, %s3656_s13  ;;  %1896 = vrot.lane.b32.xlu0 %v4693_v60, %s3656_s13  ;;  %v4768_v23 = vpack.c.bf16 %v2596_v26, %v2595_v49  ;;  %v2312_v49 = vsel %vm2290_vm15, %v4727_v25, %v4548_v13  ;;  %s269_s13 = sand.u32 1, %s3642_s25  }
 0x1e6   : > { %v4770_v1 = vpack.c.bf16 %v2594_v40, %v2593_v63  ;;  %v3452_v44 = vpop.f32.mrb[28].mxu1  ;;  %v1601_v63 = vsel %vm4661_vm7, 0.0, %v1404_v19  ;;  %v5360_v19 = vld [vmem:[#allocation7_spill] sm:$0xff] }
 0x1e7   : > { %v1752_v33 = vpop.permute.xlu1 %1751  ;;  %v2515_v5 = vadd.f32 %v3452_v44, %v4625_v52  ;;  %v2506_v3 = vpop.f32.mrb[29].mxu1  ;;  %v1618_v34 = vpack.c.bf16 %v1601_v63, %v1403_v12  ;;  %v2115_v44 = vsel %vm5361_vm1, %v5360_v19, %v4546_v56  ;;  %v1670_v12 = vld [vmem:[#allocation2 + $0x118] sm:$0xff] }
 0x1e8   : > { %v4776_v38 = vsel %vm5348_vm3, %v5357_v39, %v1752_v33  ;;  %v4778_v35 = vpop.permute.xlu0 %2005  ;;  %v2507_v60 = vadd.f32 %v4625_v52, %v2506_v3  ;;  %v3453_v30 = vpop.f32.mrb[30].mxu1  ;;  %v1518_v3 = vld [vmem:[#allocation2 + $0x10f] sm:$0xff]  ;;  %v1549_v39 = vsel %vm5358_vm14, 0.0, %v1517_v0  ;;  %vm5371_vm3 = vmmov %vm5361_vm1 }
 0x1e9   : > { %1946 = vrot.lane.b32.xlu1 %v1619_v27, %s3658_s15  ;;  %2025 = vrot.lane.b32.xlu0 %v1569_v24, %s3654_s8  ;;  %v2599_v59 = vmax.f32 %v2515_v5, 0.0  ;;  %v2518_v36 = vadd.f32 %v3453_v30, %v4625_v52  ;;  %v2509_v32 = vpop.f32.mrb[31].mxu1  ;;  %vm5372_vm14 = vmmov %vm5352_vm4 }
 0x1ea   : > { %v2597_v54 = vmax.f32 %v2507_v60, 0.0  ;;  %v2510_v9 = vadd.f32 %v4625_v52, %v2509_v32  ;;  %v1650_v60 = vsel %vm4220_vm8, 0.0, %v1517_v0  ;;  %v1566_v32 = vpack.c.bf16 %v1518_v3, %v1549_v39  ;;  %vm5363_vm8 = vmmov %vm5361_vm1 }
 0x1eb   : > { %v1939_v62 = vpop.permute.xlu1 %1938  ;;  %v2600_v43 = vmax.f32 %v2518_v36, 0.0  ;;  %v1668_v41 = vpack.c.bf16 %v1518_v3, %v1650_v60 }
 0x1ec   : > { %v4795_v47 = vsel %vm5359_vm13, %v2215_v21, %v1939_v62  ;;  %v2066_v29 = vpop.permute.xlu0 %2065  ;;  %v2598_v55 = vmax.f32 %v2510_v9, 0.0  ;;  %v1704_v62 = vsel %vm4661_vm7, 0.0, %v4752_v28  ;;  %vm5364_vm7 = vmmov %vm5344_vm9 }
 0x1ed   : > { %v4803_v8 = vsel %vm2323_vm6, %v2312_v49, %v2066_v29  ;;  %v4805_v57 = vpack.c.bf16 %v2600_v43, %v2599_v59  ;;  %1994 = vrot.lane.b32.xlu1 %v1669_v7, %s3659_s16  ;;  %2071 = vrot.lane.b32.xlu0 %v1720_v58, %s3660_s17  ;;  %v1672_v7 = vpack.c.bf16 %v1671_v48, %v1670_v12  ;;  %v1673_v49 = vld [vmem:[#allocation2 + $0x119] sm:$0xff]  ;;  %vm5366_vm9 = vmmov %vm5359_vm13 }
 0x1ee   : > { %v4809_v24 = vpack.c.bf16 %v2598_v55, %v2597_v54  ;;  %v3456_v26 = vpop.f32.mrb[32].mxu1  ;;  %v1674_v54 = vld [vmem:[#allocation2 + $0x121] sm:$0xff]  ;;  %v1721_v0 = vpack.c.bf16 %v1704_v62, %v4760_v37  ;;  %vm5367_vm10 = vmmov %vm5364_vm7 }
 0x1ef   : > { %v2531_v13 = vadd.f32 %v3456_v26, %v4625_v52  ;;  %v2522_v25 = vpop.f32.mrb[33].mxu1  ;;  %v4812_v40 = vpop.permute.xlu1 %1894  ;;  %v1706_v29 = vsel %vm4748_vm11, 0.0, %v1674_v54  ;;  %v5362_v48 = vld [vmem:[#allocation8_spill] sm:$0xff]  ;;  %vm5369_vm11 = vmmov %vm5361_vm1 }
 0x1f0   : > { %v2523_v33 = vadd.f32 %v4625_v52, %v2522_v25  ;;  %v1812_v27 = vpop.permute.xlu0 %1811  ;;  %v3457_v5 = vpop.f32.mrb[34].mxu1  ;;  %vm5374_vm13 = vmmov %vm5361_vm1 }
 0x1f1   : > { %v2151_v30 = vsel %vm2125_vm0, %v2115_v44, %v1812_v27  ;;  %v2534_v17 = vadd.f32 %v3457_v5, %v4625_v52  ;;  %v2525_v18 = vpop.f32.mrb[35].mxu1  ;;  %1817 = vrot.lane.b32.xlu1 %v1516_v15, %s3655_s9  ;;  %1944 = vrot.lane.b32.xlu0 %v1618_v34, %s3658_s15  ;;  %v2603_v59 = vmax.f32 %v2531_v13, 0.0  ;;  %v1722_v15 = vpack.c.bf16 %v1706_v29, %v1673_v49  ;;  %vm5375_vm1 = vmmov %vm5352_vm4 }
 0x1f2   : > { %v2526_v56 = vadd.f32 %v4625_v52, %v2525_v18  ;;  %v2601_v9 = vmax.f32 %v2523_v33, 0.0 }
 0x1f3   : > { %v2604_v36 = vmax.f32 %v2534_v17, 0.0  ;;  %v4827_v50 = vpop.permute.xlu1 %1970 }
 0x1f4   : > { %v2602_v31 = vmax.f32 %v2526_v56, 0.0  ;;  %v4829_v21 = vpop.permute.xlu0 %2021 }
 0x1f5   : > { %v4834_v43 = vpack.c.bf16 %v2604_v36, %v2603_v59  ;;  %1865 = vrot.lane.b32.xlu1 %v1566_v32, %s3657_s14  ;;  %1992 = vrot.lane.b32.xlu0 %v1668_v41, %s3659_s16  ;;  %v2088_v59 = vsel %vm5363_vm8, %v5362_v48, %v4574_v42  ;;  %vm5376_vm8 = vmmov %vm5366_vm9  ;;  %s3233_s14 = sshll.u32 %s269_s13, 7 }
 0x1f6   : > { %v4838_v58 = vpack.c.bf16 %v2602_v31, %v2601_v9  ;;  %v3460_v55 = vpop.f32.mrb[36].mxu1  ;;  %v2133_v9 = vsel %vm2125_vm0, %v2088_v59, %v4638_v4  ;;  %s5040_s15 = scalar_lea.vmem [#allocation3], %s3233_s14 }
 0x1f7   : > { %v2004_v63 = vpop.permute.xlu1 %2003  ;;  %v2547_v53 = vadd.f32 %v3460_v55, %v4625_v52  ;;  %v2538_v28 = vpop.f32.mrb[37].mxu1  ;;  %v2166_v29 = vsel %vm5352_vm4, %v2133_v9, %v4666_v11  ;;  %vm5379_vm4 = vmmov %vm5367_vm10  ;;  %s3167_s16 = sshll.u32 %s5040_s15, 4  ;;  %s5165_s16 = int_to_ptr.vmem [resolvable:$true] %s3167_s16 }
 0x1f8   : > { %v4844_v26 = vpop.permute.xlu0 %1843  ;;  %v2539_v13 = vadd.f32 %v4625_v52, %v2538_v28  ;;  %v3461_v25 = vpop.f32.mrb[38].mxu1  ;;  %v2199_v4 = vsel %vm2191_vm5, %v2166_v29, %v4499_v6  ;;  %v5368_v6 = vld [vmem:[#allocation11_spill] sm:$0xff]  ;;  %s3588_s21 = scalar_lea.vmem %s5165_s16, 2048  ;;  %p3595_p0 = scmp.lt.s32.totalorder %s5165_s16, %s3593_s29 }
 0x1f9   : > { %2027 = vrot.lane.b32.xlu1 %v1672_v7, %s3654_s8  ;;  %2073 = vrot.lane.b32.xlu0 %v1721_v0, %s3660_s17  ;;  %v2607_v34 = vmax.f32 %v2547_v53, 0.0  ;;  %v2550_v16 = vadd.f32 %v3461_v25, %v4625_v52  ;;  %v2541_v19 = vpop.f32.mrb[39].mxu1  ;;  %p3589_p11 = scmp.ne.s32.totalorder %s5165_s16, %s3588_s21  ;;  %p3596_p1 = scmp.lt.s32.totalorder %s3594_s22, %s3588_s21 }
 0x1fa   : > { %v2605_v44 = vmax.f32 %v2539_v13, 0.0  ;;  %v2542_v37 = vadd.f32 %v4625_v52, %v2541_v19 }
 0x1fb   : > { %v1750_v33 = vpop.permute.xlu1 %1749  ;;  %v2608_v27 = vmax.f32 %v2550_v16, 0.0  ;;  %p3590_p12 = pnand %p3589_p11, %p3741_p5  ;;  %p3597_p2 = por %p3596_p1, %p3595_p0 }
 0x1fc   : > { %v4851_v5 = vpop.permute.xlu0 %1876  ;;  %v2606_v3 = vmax.f32 %v2542_v37, 0.0 }
 0x1fd   : > { %2075 = vrot.lane.b32.xlu1 %v1722_v15, %s3660_s17  ;;  %v4854_v39 = vpack.c.bf16 %v2608_v27, %v2607_v34  ;;  %v2232_v15 = vsel %vm5366_vm9, %v2199_v4, %v4736_v22  ;;  %vm5380_vm9 = vmmov %vm5379_vm4  ;;  %p3591_p13 = pneg %p3590_p12 }
 0x1fe   : > { %v4856_v60 = vpack.c.bf16 %v2606_v3, %v2605_v44  ;;  %v3464_v17 = vpop.f32.mrb[40].mxu1  ;;  %v2265_v16 = vsel %vm5367_vm10, %v2232_v15, %v4827_v50  ;;  %vm5381_vm10 = vmmov %vm5356_vm2 }
 0x1ff   : > { %v1987_v18 = vpop.permute.xlu1 %1986  ;;  %v2563_v56 = vadd.f32 %v3464_v17, %v4625_v52  ;;  %v2554_v12 = vpop.f32.mrb[41].mxu1  ;;  %v2298_v27 = vsel %vm2290_vm15, %v2265_v16, %v2004_v63  ;;  %p3598_p3 = pnand %p3597_p2, %p3591_p13 }
 0x200   : > { %v2281_v36 = vsel %vm5364_vm7, %v4795_v47, %v1987_v18  ;;  %v1860_v32 = vpop.permute.xlu0 %1859  ;;  %v2555_v41 = vadd.f32 %v4625_v52, %v2554_v12  ;;  %v3465_v54 = vpop.f32.mrb[42].mxu1  ;;  %vm5377_vm7 = vmmov %vm5375_vm1 }
 0x201   : > { %v2184_v31 = vsel %vm5365_vm12, %v2151_v30, %v1860_v32  ;;  %v2611_v62 = vmax.f32 %v2563_v56, 0.0  ;;  %v2566_v7 = vadd.f32 %v3465_v54, %v4625_v52  ;;  %v2557_v49 = vpop.f32.mrb[43].mxu1  ;;  %vm5378_vm12 = vmmov %vm5376_vm8 }
 0x202   : > { %v2609_v42 = vmax.f32 %v2555_v41, 0.0  ;;  %v2558_v55 = vadd.f32 %v4625_v52, %v2557_v49 }
 0x203   : > { %v2020_v47 = vpop.permute.xlu1 %2019  ;;  %v2612_v0 = vmax.f32 %v2566_v7, 0.0 }
 0x204   : > { %v2314_v53 = vsel %vm2290_vm15, %v2281_v36, %v2020_v47  ;;  %v1893_v28 = vpop.permute.xlu0 %1892  ;;  %v2610_v13 = vmax.f32 %v2558_v55, 0.0 }
 0x205   : > { %v2217_v30 = vsel %vm2191_vm5, %v2184_v31, %v1893_v28  ;;  %v4876_v25 = vpack.c.bf16 %v2612_v0, %v2611_v62  ;;  %v5370_v31 = vld [vmem:[#allocation10_spill] sm:$0xff] }
 0x206   : > { %v4880_v11 = vpack.c.bf16 %v2610_v13, %v2609_v42  ;;  %v3468_v34 = vpop.f32.mrb[44].mxu1  ;;  %v2094_v62 = vsel %vm5371_vm3, %v5370_v31, %v1750_v33  ;;  %v5373_v33 = vld [vmem:[#allocation6_spill] sm:$0xff]  ;;  %v5382_v31 = vld [vmem:[#allocation15_spill] sm:$0xff] }
 0x207   : > { %v1766_v19 = vpop.permute.xlu1 %1765  ;;  %v2579_v44 = vadd.f32 %v3468_v34, %v4625_v52  ;;  %v2570_v37 = vpop.f32.mrb[45].mxu1  ;;  %v2091_v15 = vsel %vm5374_vm13, %v5373_v33, %v4512_v61  ;;  %v5387_v33 = vld [vmem:[#allocation18_spill] sm:$0xff]  ;;  %vm5388_vm13 = vmmov %vm5381_vm10 }
 0x208   : > { %v2118_v3 = vsel %vm5369_vm11, %v5368_v6, %v1766_v19  ;;  %v2052_v17 = vpop.permute.xlu0 %2051  ;;  %v2571_v18 = vadd.f32 %v4625_v52, %v2570_v37  ;;  %v3469_v56 = vpop.f32.mrb[46].mxu1  ;;  %v2135_v19 = vsel %vm2125_vm0, %v2091_v15, %v4758_v20  ;;  %vm5383_vm11 = vmmov %vm5371_vm3 }
 0x209   : > { %v2331_v22 = vsel %vm2323_vm6, %v2298_v27, %v2052_v17  ;;  %v2615_v12 = vmax.f32 %v2579_v44, 0.0  ;;  %v2582_v48 = vadd.f32 %v3469_v56, %v4625_v52  ;;  %v2573_v59 = vpop.f32.mrb[47].mxu1  ;;  %vm5385_vm3 = vmmov %vm5379_vm4 }
 0x20a   : > { %3485 = vmatmul.mubr.msk.bf16.gmra.mrb[20].mxu0 %vm5356_vm2, %v2331_v22  ;;  %v2613_v50 = vmax.f32 %v2571_v18, 0.0  ;;  %v2574_v36 = vadd.f32 %v4625_v52, %v2573_v59  ;;  %vm5384_vm2 = vmmov %vm5376_vm8 }
 0x20b   : > { %v1798_v32 = vpop.permute.xlu1 %1797  ;;  %v2616_v63 = vmax.f32 %v2582_v48, 0.0 }
 0x20c   : > { %v1925_v41 = vpop.permute.xlu0 %1924  ;;  %v2614_v54 = vmax.f32 %v2574_v36, 0.0  ;;  %v2137_v49 = vsel %vm2125_vm0, %v2094_v62, %v1798_v32 }
 0x20d   : > { %v4893_v9 = vpack.c.bf16 %v2616_v63, %v2615_v12 }
 0x20e   : > { %v4897_v7 = vpack.c.bf16 %v2614_v54, %v2613_v50 }
 0x20f   : > { %v1846_v29 = vpop.permute.xlu1 %1845 }
 0x210   : > { %v2170_v42 = vsel %vm5372_vm14, %v2137_v49, %v1846_v29  ;;  %v1973_v55 = vpop.permute.xlu0 %1972  ;;  %vm5386_vm14 = vmmov %vm5375_vm1 }
 0x211   : > { %v2203_v52 = vsel %vm2191_vm5, %v2170_v42, %v4756_v51 }
 0x213   : > { %v1814_v47 = vpop.permute.xlu1 %1813 }
 0x214   : > { %v2153_v0 = vsel %vm2125_vm0, %v2118_v3, %v1814_v47  ;;  %v2068_v28 = vpop.permute.xlu0 %2067 }
 0x215   : > { %v4905_v13 = vsel %vm2323_vm6, %v2314_v53, %v2068_v28  ;;  %v2168_v53 = vsel %vm5377_vm7, %v2135_v19, %v4844_v26  ;;  %v5389_v19 = vld [vmem:[#allocation20_spill] sm:$0xff] }
 0x216   : > { %v2201_v37 = vsel %vm2191_vm5, %v2168_v53, %v4851_v5 }
 0x217   : > { %v1862_v4 = vpop.permute.xlu1 %1861  ;;  %v2234_v61 = vsel %vm5378_vm12, %v2201_v37, %v1925_v41  ;;  %v5392_v37 = vld [vmem:[#allocation12_spill] sm:$0xff] }
 0x218   : > { %v2186_v34 = vsel %vm5375_vm1, %v2153_v0, %v1862_v4  ;;  %v1941_v16 = vpop.permute.xlu0 %1940  ;;  %v2267_v3 = vsel %vm5379_vm4, %v2234_v61, %v1973_v55  ;;  %vm5390_vm1 = vmmov %vm5384_vm2 }
 0x219   : > { %v2250_v51 = vsel %vm5376_vm8, %v2217_v30, %v1941_v16  ;;  %v4916_v44 = vsel %vm2191_vm5, %v2186_v34, %v4812_v40  ;;  %v2300_v17 = vsel %vm2290_vm15, %v2267_v3, %v4778_v35  ;;  %vm5391_vm8 = vmmov %vm5377_vm7 }
 0x21a   : > { %vm5393_vm7 = vmmov %vm5383_vm11 }
 0x21b   : > { %v1927_v27 = vpop.permute.xlu1 %1926  ;;  %vm5394_vm12 = vmmov %vm5390_vm1 }
 0x21c   : > { %v1989_v6 = vpop.permute.xlu0 %1988  ;;  %v2236_v49 = vsel %vm5384_vm2, %v2203_v52, %v1927_v27  ;;  %vm5395_vm4 = vmmov %vm5391_vm8 }
 0x21d   : > { %v2283_v20 = vsel %vm5380_vm9, %v2250_v51, %v1989_v6  ;;  %vm5397_vm9 = vmmov %vm5385_vm3 }
 0x21e   : > { %v4927_v30 = vsel %vm2290_vm15, %v2283_v20, %v4829_v21  ;;  %vm5400_vm2 = vmmov %vm5385_vm3 }
 0x21f   : > { %v1883_v40 = vpop.permute.xlu1 %1882 }
 0x220   : > { %v2054_v26 = vpop.permute.xlu0 %2053 }
 0x221   : > { %v2333_v18 = vsel %vm2323_vm6, %v2300_v17, %v2054_v26 }
 0x222   : > { %3488 = vmatprep.mubr.msk.bf16.mxu0 %vm5381_vm10, %v2333_v18  ;;  %v5396_v18 = vld [vmem:[#allocation21_spill] sm:$0xff]  ;;  %vm5398_vm10 = vmmov %vm5385_vm3 }
 0x223   : > { %v1756_v5 = vpop.permute.xlu1 %1755 }
 0x224   : > { %v1800_v56 = vpop.permute.xlu0 %1799  ;;  %v2103_v62 = vsel %vm5383_vm11, %v5382_v31, %v1756_v5  ;;  %vm5399_vm11 = vmmov %vm5390_vm1 }
 0x225   : > { %v2139_v52 = vsel %vm2125_vm0, %v4776_v38, %v1800_v56 }
 0x227   : > { %v4933_v22 = vpop.permute.xlu1 %1942 }
 0x228   : > { %v2010_v12 = vpop.permute.xlu0 %2009 }
 0x22b   : > { %v1975_v48 = vpop.permute.xlu1 %1974 }
 0x22c   : > { %v1848_v59 = vpop.permute.xlu0 %1847  ;;  %v2269_v42 = vsel %vm5385_vm3, %v2236_v49, %v1975_v48  ;;  %vm5402_vm3 = vmmov %vm5388_vm13  ;;  %v5404_v49 = vld [vmem:[#allocation19_spill] sm:$0xff] }
 0x22d   : > { %v2172_v53 = vsel %vm5391_vm8, %v2139_v52, %v1848_v59  ;;  %v5413_v52 = vld [vmem:[#allocation13_spill] sm:$0xff] }
 0x22f   : > { %v2008_v50 = vpop.permute.xlu1 %2007 }
 0x230   : > { %v1881_v36 = vpop.permute.xlu0 %1880  ;;  %v2302_v0 = vsel %vm2290_vm15, %v2269_v42, %v2008_v50 }
 0x231   : > { %v2205_v61 = vsel %vm2191_vm5, %v2172_v53, %v1881_v36 }
 0x233   : > { %v1754_v21 = vpop.permute.xlu1 %1753 }
 0x234   : > { %v2058_v32 = vpop.permute.xlu0 %2057  ;;  %v2100_v27 = vsel %vm5393_vm7, %v5392_v37, %v1754_v21 }
 0x237   : > { %v1931_v63 = vpop.permute.xlu1 %1930 }
 0x238   : > { %v1804_v41 = vpop.permute.xlu0 %1803 }
 0x239   : > { %v2143_v29 = vsel %vm2125_vm0, %v2103_v62, %v1804_v41  ;;  %v5401_v41 = vld [vmem:[#allocation16_spill] sm:$0xff]  ;;  %v5403_v62 = vld [vmem:[#allocation17_spill] sm:$0xff] }
 0x23b   : > { %v1979_v54 = vpop.permute.xlu1 %1978 }
 0x23c   : > { %v1852_v35 = vpop.permute.xlu0 %1851 }
 0x23d   : > { %v2176_v55 = vsel %vm5386_vm14, %v2143_v29, %v1852_v35  ;;  %vm5405_vm14 = vmmov %vm5402_vm3 }
 0x23e   : > { %v2209_v15 = vsel %vm2191_vm5, %v2176_v55, %v5387_v33 }
 0x23f   : > { %v1991_v47 = vpop.permute.xlu1 %1990  ;;  %v2242_v51 = vsel %vm5390_vm1, %v2209_v15, %v5389_v19  ;;  %vm5408_vm1 = vmmov %vm5402_vm3 }
 0x240   : > { %v2056_v28 = vpop.permute.xlu0 %2055  ;;  %v2275_v38 = vsel %vm5397_vm9, %v2242_v51, %v5396_v18  ;;  %vm5409_vm8 = vmmov %vm5408_vm1  ;;  %vm5414_vm9 = vcmask 64512  }
 0x241   : > { %v2335_v4 = vsel %vm2323_vm6, %v2302_v0, %v2056_v28  ;;  %v2308_v35 = vsel %vm2290_vm15, %v2275_v38, %v5401_v41  ;;  %vm5410_vm7 = vmmov %vm5408_vm1 }
 0x242   : > { %3489 = vmatmul.mubr.msk.bf16.gmra.mrb[24].mxu0 %vm5388_vm13, %v2335_v4  ;;  %vm5407_vm13 = vmmov %vm5402_vm3 }
 0x243   : > { %v1802_v34 = vpop.permute.xlu1 %1801 }
 0x244   : > { %v1929_v16 = vpop.permute.xlu0 %1928  ;;  %v2141_v6 = vsel %vm2125_vm0, %v2100_v27, %v1802_v34  ;;  %v5416_v27 = vld [vmem:[#allocation14_spill] sm:$0xff] }
 0x245   : > { %v2238_v20 = vsel %vm5394_vm12, %v2205_v61, %v1929_v16  ;;  %vm5411_vm12 = vmmov %vm5408_vm1 }
 0x247   : > { %v1850_v3 = vpop.permute.xlu1 %1849 }
 0x248   : > { %v2174_v17 = vsel %vm5395_vm4, %v2141_v6, %v1850_v3  ;;  %v1977_v26 = vpop.permute.xlu0 %1976  ;;  %vm5412_vm4 = vmmov %vm5399_vm11 }
 0x249   : > { %v2207_v5 = vsel %vm2191_vm5, %v2174_v17, %v1883_v40  ;;  %v2271_v56 = vsel %vm5398_vm10, %v2238_v20, %v1977_v26  ;;  %vm5415_vm10 = vmmov %vm5400_vm2 }
 0x24a   : > { %v2240_v48 = vsel %vm5399_vm11, %v2207_v5, %v1931_v63  ;;  %v2304_v59 = vsel %vm2290_vm15, %v2271_v56, %v2010_v12  ;;  %v5406_v12 = vld [vmem:[#allocation22_spill] sm:$0xff]  ;;  %vm5417_vm11 = vmmov %vm5414_vm9 }
 0x24b   : > { %v2024_v50 = vpop.permute.xlu1 %2023  ;;  %v2337_v36 = vsel %vm2323_vm6, %v2304_v59, %v2058_v32  ;;  %v2273_v21 = vsel %vm5400_vm2, %v2240_v48, %v1979_v54  ;;  %v2341_v63 = vsel %vm2323_vm6, %v2308_v35, %v5406_v12  ;;  %vm5418_vm2 = vcmask 195584   ;;  %v5015_v35 = vld [vmem:[%s5226_s6] ss:$0 sm:$0xff] }
 0x24c   : > { %v2070_v31 = vpop.permute.xlu0 %2069  ;;  %3492 = vmatprep.mubr.msk.bf16.mxu0 %vm5402_vm3, %v2337_v36  ;;  %v2306_v40 = vsel %vm2290_vm15, %v2273_v21, %v5403_v62  ;;  %vm5419_vm3 = vmmov %vm5408_vm1 }
 0x24d   : > { %v2339_v29 = vsel %vm2323_vm6, %v2306_v40, %v5404_v49  ;;  %v2349_v15 = vsel %vm2323_vm6, %v4927_v30, %v2070_v31 }
 0x24e   : > { %3493 = vmatmul.mubr.msk.bf16.gmra.mrb[28].mxu0 %vm5405_vm14, %v2339_v29  ;;  %vm5420_vm14 = vmmov %vm5412_vm4 }
 0x24f   : > { %v1768_v32 = vpop.permute.xlu1 %1767  ;;  %3496 = vmatprep.mubr.msk.bf16.mxu0 %vm5407_vm13, %v2341_v63  ;;  %vm5421_vm13 = vmmov %vm5418_vm2 }
 0x250   : > { %v1816_v54 = vpop.permute.xlu0 %1815 }
 0x253   : > { %v1770_v42 = vpop.permute.xlu1 %1769 }
 0x254   : > { %v1864_v55 = vpop.permute.xlu0 %1863  ;;  %v2124_v61 = vsel %vm5417_vm11, %v5416_v27, %v1770_v42 }
 0x256   : > { %3497 = vmatmul.mubr.msk.bf16.gmra.mrb[32].mxu0 %vm5408_vm1, %v4677_v10  ;;  %v2252_v10 = vsel %vm5412_vm4, %v4916_v44, %v4933_v22  ;;  %vm5422_vm1 = vmmov %vm5415_vm10 }
 0x257   : > { %v1899_v0 = vpop.permute.xlu1 %1898  ;;  %3500 = vmatprep.mubr.msk.bf16.mxu0 %vm5409_vm8, %v4803_v8  ;;  %v2121_v8 = vsel %vm5414_vm9, %v5413_v52, %v1768_v32  ;;  %v2285_v19 = vsel %vm5415_vm10, %v2252_v10, %v1991_v47  ;;  %vm5423_vm8 = vmmov %vm5412_vm4 }
 0x258   : > { %v1897_v28 = vpop.permute.xlu0 %1896  ;;  %v2318_v53 = vsel %vm2290_vm15, %v2285_v19, %v2024_v50  ;;  %v2155_v37 = vsel %vm2125_vm0, %v2121_v8, %v1816_v54 }
 0x259   : > { %v2188_v6 = vsel %vm5418_vm2, %v2155_v37, %v1864_v55 }
 0x25a   : > { %v2221_v44 = vsel %vm2191_vm5, %v2188_v6, %v1897_v28 }
 0x25b   : > { %v1947_v4 = vpop.permute.xlu1 %1946 }
 0x25c   : > { %v2026_v33 = vpop.permute.xlu0 %2025 }
 0x25e   : > { %3501 = vmatmul.mubr.msk.bf16.gmra.mrb[36].mxu0 %vm5410_vm7, %v4905_v13  ;;  %vm5424_vm7 = vmmov %vm5422_vm1 }
 0x25f   : > { %v1995_v34 = vpop.permute.xlu1 %1994  ;;  %3504 = vmatprep.mubr.msk.bf16.mxu0 %vm5411_vm12, %v2349_v15  ;;  %vm5425_vm12 = vmmov %vm5419_vm3 }
 0x260   : > { %v2072_v16 = vpop.permute.xlu0 %2071 }
 0x261   : > { %v2351_v13 = vsel %vm2323_vm6, %v2318_v53, %v2072_v16 }
 0x263   : > { %v1818_v51 = vpop.permute.xlu1 %1817 }
 0x264   : > { %v1945_v30 = vpop.permute.xlu0 %1944  ;;  %v2157_v22 = vsel %vm2125_vm0, %v2124_v61, %v1818_v51 }
 0x265   : > { %v2254_v3 = vsel %vm5420_vm14, %v2221_v44, %v1945_v30 }
 0x266   : > { %3505 = vmatmul.mubr.msk.bf16.gmra.mrb[40].mxu0 %vm5419_vm3, %v2351_v13 }
 0x267   : > { %v1866_v47 = vpop.permute.xlu1 %1865 }
 0x268   : > { %v2190_v20 = vsel %vm5421_vm13, %v2157_v22, %v1866_v47  ;;  %v1993_v17 = vpop.permute.xlu0 %1992 }
 0x269   : > { %v2223_v26 = vsel %vm2191_vm5, %v2190_v20, %v1899_v0  ;;  %v2287_v18 = vsel %vm5422_vm1, %v2254_v3, %v1993_v17  ;;  %vm5426_vm5 = vmmov %vm5419_vm3 }
 0x26a   : > { %v2256_v38 = vsel %vm5423_vm8, %v2223_v26, %v1947_v4  ;;  %v2320_v48 = vsel %vm2290_vm15, %v2287_v18, %v2026_v33 }
 0x26b   : > { %v2028_v5 = vpop.permute.xlu1 %2027  ;;  %v2289_v56 = vsel %vm5424_vm7, %v2256_v38, %v1995_v34 }
 0x26c   : > { %v2074_v59 = vpop.permute.xlu0 %2073  ;;  %v2322_v36 = vsel %vm2290_vm15, %v2289_v56, %v2028_v5 }
 0x26d   : > { %v2353_v50 = vsel %vm2323_vm6, %v2320_v48, %v2074_v59 }
 0x26e   : > { %3508 = vmatprep.mubr.msk.bf16.mxu0 %vm5425_vm12, %v2353_v50 }
 0x26f   : > { %v2076_v21 = vpop.permute.xlu1 %2075 }
 0x270   : > { %v2355_v41 = vsel %vm2323_vm6, %v2322_v36, %v2076_v21  ;;  %vm3120_vm6 = vcmask 257024  }
 0x271   : > { %3509 = vmatmul.mubr.msk.bf16.gmra.mrb[44].mxu0 %vm5426_vm5, %v2355_v41 }
 0x29d   : > { %v3482_v31 = vpop.f32.mrb[16].mxu0 }
 0x29e   : > { %v2746_v62 = vadd.f32 %v3482_v31, %v5015_v35  ;;  %v2737_v40 = vpop.f32.mrb[17].mxu0 }
 0x29f   : > { %v2738_v49 = vadd.f32 %v5015_v35, %v2737_v40  ;;  %v3483_v29 = vpop.f32.mrb[18].mxu0 }
 0x2a0   : > { %v2749_v12 = vadd.f32 %v3483_v29, %v5015_v35  ;;  %v2740_v63 = vpop.f32.mrb[19].mxu0  ;;  %v2866_v54 = vmax.f32 %v2746_v62, 0.0 }
 0x2a1   : > { %v2741_v32 = vadd.f32 %v5015_v35, %v2740_v63  ;;  %v2864_v55 = vmax.f32 %v2738_v49, 0.0 }
 0x2a2   : > { %v2867_v42 = vmax.f32 %v2749_v12, 0.0 }
 0x2a3   : > { %v2865_v0 = vmax.f32 %v2741_v32, 0.0 }
 0x2a4   : > { %v2897_v28 = vpack.c.bf16 %v2867_v42, %v2866_v54 }
 0x2a5   : > { %v2896_v4 = vpack.c.bf16 %v2865_v0, %v2864_v55 }
 0x2a6   : > { %2930 = vrot.lane.b32.xlu1 %v2897_v28, %s3655_s9 }
 0x2a7   : > { %2928 = vrot.lane.b32.xlu0 %v2896_v4, %s3655_s9 }
 0x2dd   : > { %v3486_v33 = vpop.f32.mrb[20].mxu0 }
 0x2de   : > { %v2762_v15 = vadd.f32 %v3486_v33, %v5015_v35  ;;  %v2753_v34 = vpop.f32.mrb[21].mxu0 }
 0x2df   : > { %v2754_v16 = vadd.f32 %v5015_v35, %v2753_v34  ;;  %v3487_v10 = vpop.f32.mrb[22].mxu0 }
 0x2e0   : > { %v2765_v52 = vadd.f32 %v3487_v10, %v5015_v35  ;;  %v2756_v8 = vpop.f32.mrb[23].mxu0  ;;  %v2870_v51 = vmax.f32 %v2762_v15, 0.0 }
 0x2e1   : > { %v2757_v19 = vadd.f32 %v5015_v35, %v2756_v8  ;;  %v2868_v30 = vmax.f32 %v2754_v16, 0.0 }
 0x2e2   : > { %v2871_v53 = vmax.f32 %v2765_v52, 0.0 }
 0x2e3   : > { %v2869_v37 = vmax.f32 %v2757_v19, 0.0 }
 0x2e4   : > { %v2899_v13 = vpack.c.bf16 %v2871_v53, %v2870_v51 }
 0x2e5   : > { %v2898_v27 = vpack.c.bf16 %v2869_v37, %v2868_v30 }
 0x2e6   : > { %2934 = vrot.lane.b32.xlu1 %v2899_v13, %s3655_s9 }
 0x2e7   : > { %2932 = vrot.lane.b32.xlu0 %v2898_v27, %s3655_s9 }
 0x315   : > { %v3490_v61 = vpop.f32.mrb[24].mxu0 }
 0x316   : > { %v2778_v6 = vadd.f32 %v3490_v61, %v5015_v35  ;;  %v2769_v44 = vpop.f32.mrb[25].mxu0 }
 0x317   : > { %v2770_v22 = vadd.f32 %v5015_v35, %v2769_v44  ;;  %v3491_v47 = vpop.f32.mrb[26].mxu0 }
 0x318   : > { %v2781_v3 = vadd.f32 %v3491_v47, %v5015_v35  ;;  %v2931_v20 = vpop.permute.xlu1 %2930  ;;  %v2772_v17 = vpop.f32.mrb[27].mxu0  ;;  %v2874_v26 = vmax.f32 %v2778_v6, 0.0 }
 0x319   : > { %v2965_v18 = vsel %vm2125_vm0, %v4674_v46, %v2931_v20  ;;  %v2773_v38 = vadd.f32 %v5015_v35, %v2772_v17  ;;  %v2929_v5 = vpop.permute.xlu0 %2928  ;;  %v2872_v36 = vmax.f32 %v2770_v22, 0.0 }
 0x31a   : > { %v2875_v56 = vmax.f32 %v2781_v3, 0.0  ;;  %v3310_v48 = vcombine.low %v2965_v18, %v2965_v18  ;;  %v3311_v59 = vcombine.high %v2965_v18, %v2965_v18  ;;  %v2962_v50 = vsel %vm2125_vm0, %v4683_v2, %v2929_v5 }
 0x31b   : > { %v2873_v21 = vmax.f32 %v2773_v38, 0.0  ;;  %v3308_v41 = vcombine.low %v2962_v50, %v2962_v50  ;;  %v3309_v31 = vcombine.high %v2962_v50, %v2962_v50 }
 0x31c   : > { %v2901_v62 = vpack.c.bf16 %v2875_v56, %v2874_v26  ;;  %3123 = vst.msk [vmem:[%s5040_s15 + $0x8] sm:$0xf] %vm3120_vm6, %v3310_v48  ;;  %3124 = vst.msk [vmem:[%s5040_s15 + $0xc] sm:$0xf] %vm3120_vm6, %v3311_v59 }
 0x31d   : > { %v2900_v46 = vpack.c.bf16 %v2873_v21, %v2872_v36  ;;  %3121 = vst.msk [vmem:[%s5040_s15] sm:$0xf] %vm3120_vm6, %v3308_v41  ;;  %3122 = vst.msk [vmem:[%s5040_s15 + $0x4] sm:$0xf] %vm3120_vm6, %v3309_v31 }
 0x31e   : > { %2938 = vrot.lane.b32.xlu1 %v2901_v62, %s3655_s9 }
 0x31f   : > { %2936 = vrot.lane.b32.xlu0 %v2900_v46, %s3655_s9 }
 0x321   : > { %v3494_v2 = vpop.f32.mrb[28].mxu0 }
 0x322   : > { %v2794_v40 = vadd.f32 %v3494_v2, %v5015_v35  ;;  %v2785_v49 = vpop.f32.mrb[29].mxu0 }
 0x323   : > { %v2786_v29 = vadd.f32 %v5015_v35, %v2785_v49  ;;  %v3495_v12 = vpop.f32.mrb[30].mxu0 }
 0x324   : > { %v2797_v63 = vadd.f32 %v3495_v12, %v5015_v35  ;;  %v2788_v32 = vpop.f32.mrb[31].mxu0  ;;  %v2878_v42 = vmax.f32 %v2794_v40, 0.0 }
 0x325   : > { %v2789_v54 = vadd.f32 %v5015_v35, %v2788_v32  ;;  %v2876_v0 = vmax.f32 %v2786_v29, 0.0 }
 0x326   : > { %v2879_v55 = vmax.f32 %v2797_v63, 0.0 }
 0x327   : > { %v2877_v28 = vmax.f32 %v2789_v54, 0.0 }
 0x328   : > { %v2903_v4 = vpack.c.bf16 %v2879_v55, %v2878_v42 }
 0x329   : > { %v2902_v33 = vpack.c.bf16 %v2877_v28, %v2876_v0  ;;  %v3498_v15 = vpop.f32.mrb[32].mxu0 }
 0x32a   : > { %v2810_v34 = vadd.f32 %v3498_v15, %v5015_v35  ;;  %2942 = vrot.lane.b32.xlu1 %v2903_v4, %s3655_s9  ;;  %v2801_v16 = vpop.f32.mrb[33].mxu0 }
 0x32b   : > { %v2802_v10 = vadd.f32 %v5015_v35, %v2801_v16  ;;  %v3499_v52 = vpop.f32.mrb[34].mxu0  ;;  %2940 = vrot.lane.b32.xlu0 %v2902_v33, %s3655_s9 }
 0x32c   : > { %v2813_v8 = vadd.f32 %v3499_v52, %v5015_v35  ;;  %v2804_v19 = vpop.f32.mrb[35].mxu0  ;;  %v2882_v53 = vmax.f32 %v2810_v34, 0.0 }
 0x32d   : > { %v2805_v51 = vadd.f32 %v5015_v35, %v2804_v19  ;;  %v2880_v37 = vmax.f32 %v2802_v10, 0.0 }
 0x32e   : > { %v2883_v30 = vmax.f32 %v2813_v8, 0.0 }
 0x32f   : > { %v2881_v13 = vmax.f32 %v2805_v51, 0.0 }
 0x330   : > { %v2905_v27 = vpack.c.bf16 %v2883_v30, %v2882_v53 }
 0x331   : > { %v2904_v61 = vpack.c.bf16 %v2881_v13, %v2880_v37  ;;  %v3502_v6 = vpop.f32.mrb[36].mxu0 }
 0x332   : > { %v2826_v44 = vadd.f32 %v3502_v6, %v5015_v35  ;;  %2946 = vrot.lane.b32.xlu1 %v2905_v27, %s3655_s9  ;;  %v2817_v22 = vpop.f32.mrb[37].mxu0 }
 0x333   : > { %v2818_v47 = vadd.f32 %v5015_v35, %v2817_v22  ;;  %v3503_v3 = vpop.f32.mrb[38].mxu0  ;;  %2944 = vrot.lane.b32.xlu0 %v2904_v61, %s3655_s9 }
 0x334   : > { %v2829_v20 = vadd.f32 %v3503_v3, %v5015_v35  ;;  %v2820_v17 = vpop.f32.mrb[39].mxu0  ;;  %v2886_v18 = vmax.f32 %v2826_v44, 0.0 }
 0x335   : > { %v2821_v26 = vadd.f32 %v5015_v35, %v2820_v17  ;;  %v2884_v5 = vmax.f32 %v2818_v47, 0.0 }
 0x336   : > { %v2887_v38 = vmax.f32 %v2829_v20, 0.0 }
 0x337   : > { %v2885_v56 = vmax.f32 %v2821_v26, 0.0 }
 0x338   : > { %v2907_v48 = vpack.c.bf16 %v2887_v38, %v2886_v18 }
 0x339   : > { %v2906_v59 = vpack.c.bf16 %v2885_v56, %v2884_v5  ;;  %v3506_v50 = vpop.f32.mrb[40].mxu0 }
 0x33a   : > { %v2842_v36 = vadd.f32 %v3506_v50, %v5015_v35  ;;  %2950 = vrot.lane.b32.xlu1 %v2907_v48, %s3655_s9  ;;  %v2833_v21 = vpop.f32.mrb[41].mxu0 }
 0x33b   : > { %v2834_v41 = vadd.f32 %v5015_v35, %v2833_v21  ;;  %v3507_v31 = vpop.f32.mrb[42].mxu0  ;;  %2948 = vrot.lane.b32.xlu0 %v2906_v59, %s3655_s9 }
 0x33c   : > { %v2845_v62 = vadd.f32 %v3507_v31, %v5015_v35  ;;  %v2836_v46 = vpop.f32.mrb[43].mxu0  ;;  %v2890_v40 = vmax.f32 %v2842_v36, 0.0 }
 0x33d   : > { %v2837_v2 = vadd.f32 %v5015_v35, %v2836_v46  ;;  %v2888_v29 = vmax.f32 %v2834_v41, 0.0 }
 0x33e   : > { %v2891_v49 = vmax.f32 %v2845_v62, 0.0 }
 0x33f   : > { %v2889_v12 = vmax.f32 %v2837_v2, 0.0 }
 0x340   : > { %v2909_v63 = vpack.c.bf16 %v2891_v49, %v2890_v40 }
 0x341   : > { %v2908_v32 = vpack.c.bf16 %v2889_v12, %v2888_v29 }
 0x342   : > { %2954 = vrot.lane.b32.xlu1 %v2909_v63, %s3655_s9 }
 0x343   : > { %2952 = vrot.lane.b32.xlu0 %v2908_v32, %s3655_s9 }
 0x344   : > { %v3510_v54 = vpop.f32.mrb[44].mxu0 }
 0x345   : > { %v2858_v42 = vadd.f32 %v3510_v54, %v5015_v35  ;;  %v2849_v55 = vpop.f32.mrb[45].mxu0 }
 0x346   : > { %v2850_v0 = vadd.f32 %v5015_v35, %v2849_v55  ;;  %v3511_v28 = vpop.f32.mrb[46].mxu0 }
 0x347   : > { %v2861_v4 = vadd.f32 %v3511_v28, %v5015_v35  ;;  %v2852_v33 = vpop.f32.mrb[47].mxu0  ;;  %v2894_v34 = vmax.f32 %v2858_v42, 0.0 }
 0x348   : > { %v2853_v15 = vadd.f32 %v5015_v35, %v2852_v33  ;;  %v2892_v10 = vmax.f32 %v2850_v0, 0.0 }
 0x349   : > { %v2895_v16 = vmax.f32 %v2861_v4, 0.0 }
 0x34a   : > { %v2893_v52 = vmax.f32 %v2853_v15, 0.0 }
 0x34b   : > { %v2911_v8 = vpack.c.bf16 %v2895_v16, %v2894_v34 }
 0x34c   : > { %v2910_v19 = vpack.c.bf16 %v2893_v52, %v2892_v10 }
 0x34d   : > { %2958 = vrot.lane.b32.xlu1 %v2911_v8, %s3655_s9 }
 0x34e   : > { %2956 = vrot.lane.b32.xlu0 %v2910_v19, %s3655_s9  ;;  %s3346_s9 = sshll.u32 %s3724_s28, 11  ;;  %s5177_s28 = scalar_lea.sflag [#allocation4], %s269_s13 }
 0x34f   : > { %s5163_s20 = scalar_lea.hbm %s5227_s7, %s3346_s9 }
 0x358   : > { %v2935_v51 = vpop.permute.xlu1 %2934 }
 0x359   : > { %v2971_v53 = vsel %vm2125_vm0, %v4732_v45, %v2935_v51  ;;  %v2933_v30 = vpop.permute.xlu0 %2932 }
 0x35a   : > { %v3314_v35 = vcombine.low %v2971_v53, %v2971_v53  ;;  %v3315_v37 = vcombine.high %v2971_v53, %v2971_v53  ;;  %v2968_v13 = vsel %vm2125_vm0, %v4734_v14, %v2933_v30 }
 0x35b   : > { %v3312_v27 = vcombine.low %v2968_v13, %v2968_v13  ;;  %v3313_v61 = vcombine.high %v2968_v13, %v2968_v13 }
 0x35c   : > { %3127 = vst.msk [vmem:[%s5040_s15 + $0x18] sm:$0xf] %vm3120_vm6, %v3314_v35  ;;  %3128 = vst.msk [vmem:[%s5040_s15 + $0x1c] sm:$0xf] %vm3120_vm6, %v3315_v37 }
 0x35d   : > { %3125 = vst.msk [vmem:[%s5040_s15 + $0x10] sm:$0xf] %vm3120_vm6, %v3312_v27  ;;  %3126 = vst.msk [vmem:[%s5040_s15 + $0x14] sm:$0xf] %vm3120_vm6, %v3313_v61 }
 0x390   : > { %v2939_v45 = vpop.permute.xlu1 %2938 }
 0x391   : > { %v2977_v6 = vsel %vm2125_vm0, %v4768_v23, %v2939_v45  ;;  %v2937_v44 = vpop.permute.xlu0 %2936 }
 0x392   : > { %v3318_v22 = vcombine.low %v2977_v6, %v2977_v6  ;;  %v3319_v14 = vcombine.high %v2977_v6, %v2977_v6  ;;  %v2974_v47 = vsel %vm2125_vm0, %v4770_v1, %v2937_v44 }
 0x393   : > { %v3316_v3 = vcombine.low %v2974_v47, %v2974_v47  ;;  %v3317_v20 = vcombine.high %v2974_v47, %v2974_v47 }
 0x394   : > { %3131 = vst.msk [vmem:[%s5040_s15 + $0x28] sm:$0xf] %vm3120_vm6, %v3318_v22  ;;  %3132 = vst.msk [vmem:[%s5040_s15 + $0x2c] sm:$0xf] %vm3120_vm6, %v3319_v14 }
 0x395   : > { %3129 = vst.msk [vmem:[%s5040_s15 + $0x20] sm:$0xf] %vm3120_vm6, %v3316_v3  ;;  %3130 = vst.msk [vmem:[%s5040_s15 + $0x24] sm:$0xf] %vm3120_vm6, %v3317_v20 }
 0x39c   : > { %v2943_v23 = vpop.permute.xlu1 %2942 }
 0x39d   : > { %v2983_v17 = vsel %vm2125_vm0, %v4805_v57, %v2943_v23  ;;  %v2941_v26 = vpop.permute.xlu0 %2940 }
 0x39e   : > { %v3322_v18 = vcombine.low %v2983_v17, %v2983_v17  ;;  %v3323_v1 = vcombine.high %v2983_v17, %v2983_v17  ;;  %v2980_v38 = vsel %vm2125_vm0, %v4809_v24, %v2941_v26 }
 0x39f   : > { %v3320_v5 = vcombine.low %v2980_v38, %v2980_v38  ;;  %v3321_v56 = vcombine.high %v2980_v38, %v2980_v38 }
 0x3a0   : > { %3135 = vst.msk [vmem:[%s5040_s15 + $0x38] sm:$0xf] %vm3120_vm6, %v3322_v18  ;;  %3136 = vst.msk [vmem:[%s5040_s15 + $0x3c] sm:$0xf] %vm3120_vm6, %v3323_v1 }
 0x3a1   : > { %3133 = vst.msk [vmem:[%s5040_s15 + $0x30] sm:$0xf] %vm3120_vm6, %v3320_v5  ;;  %3134 = vst.msk [vmem:[%s5040_s15 + $0x34] sm:$0xf] %vm3120_vm6, %v3321_v56 }
 0x3a4   : > { %v2947_v57 = vpop.permute.xlu1 %2946 }
 0x3a5   : > { %v2989_v48 = vsel %vm2125_vm0, %v4834_v43, %v2947_v57  ;;  %v2945_v59 = vpop.permute.xlu0 %2944 }
 0x3a6   : > { %v3326_v50 = vcombine.low %v2989_v48, %v2989_v48  ;;  %v3327_v24 = vcombine.high %v2989_v48, %v2989_v48  ;;  %v2986_v36 = vsel %vm2125_vm0, %v4838_v58, %v2945_v59 }
 0x3a7   : > { %v3324_v21 = vcombine.low %v2986_v36, %v2986_v36  ;;  %v3325_v41 = vcombine.high %v2986_v36, %v2986_v36 }
 0x3a8   : > { %3139 = vst.msk [vmem:[%s5040_s15 + $0x48] sm:$0xf] %vm3120_vm6, %v3326_v50  ;;  %3140 = vst.msk [vmem:[%s5040_s15 + $0x4c] sm:$0xf] %vm3120_vm6, %v3327_v24 }
 0x3a9   : > { %3137 = vst.msk [vmem:[%s5040_s15 + $0x40] sm:$0xf] %vm3120_vm6, %v3324_v21  ;;  %3138 = vst.msk [vmem:[%s5040_s15 + $0x44] sm:$0xf] %vm3120_vm6, %v3325_v41 }
 0x3ac   : > { %v2951_v43 = vpop.permute.xlu1 %2950 }
 0x3ad   : > { %v2995_v31 = vsel %vm2125_vm0, %v4854_v39, %v2951_v43  ;;  %v2949_v62 = vpop.permute.xlu0 %2948 }
 0x3ae   : > { %v3330_v46 = vcombine.low %v2995_v31, %v2995_v31  ;;  %v3331_v58 = vcombine.high %v2995_v31, %v2995_v31  ;;  %v2992_v2 = vsel %vm2125_vm0, %v4856_v60, %v2949_v62 }
 0x3af   : > { %v3328_v40 = vcombine.low %v2992_v2, %v2992_v2  ;;  %v3329_v49 = vcombine.high %v2992_v2, %v2992_v2 }
 0x3b0   : > { %3143 = vst.msk [vmem:[%s5040_s15 + $0x58] sm:$0xf] %vm3120_vm6, %v3330_v46  ;;  %3144 = vst.msk [vmem:[%s5040_s15 + $0x5c] sm:$0xf] %vm3120_vm6, %v3331_v58 }
 0x3b1   : > { %3141 = vst.msk [vmem:[%s5040_s15 + $0x50] sm:$0xf] %vm3120_vm6, %v3328_v40  ;;  %3142 = vst.msk [vmem:[%s5040_s15 + $0x54] sm:$0xf] %vm3120_vm6, %v3329_v49 }
 0x3b4   : > { %v2955_v39 = vpop.permute.xlu1 %2954 }
 0x3b5   : > { %v3001_v29 = vsel %vm2125_vm0, %v4876_v25, %v2955_v39  ;;  %v2953_v60 = vpop.permute.xlu0 %2952 }
 0x3b6   : > { %v3334_v12 = vcombine.low %v3001_v29, %v3001_v29  ;;  %v3335_v63 = vcombine.high %v3001_v29, %v3001_v29  ;;  %v2998_v32 = vsel %vm2125_vm0, %v4880_v11, %v2953_v60 }
 0x3b7   : > { %v3332_v54 = vcombine.low %v2998_v32, %v2998_v32  ;;  %v3333_v42 = vcombine.high %v2998_v32, %v2998_v32 }
 0x3b8   : > { %3147 = vst.msk [vmem:[%s5040_s15 + $0x68] sm:$0xf] %vm3120_vm6, %v3334_v12  ;;  %3148 = vst.msk [vmem:[%s5040_s15 + $0x6c] sm:$0xf] %vm3120_vm6, %v3335_v63 }
 0x3b9   : > { %3145 = vst.msk [vmem:[%s5040_s15 + $0x60] sm:$0xf] %vm3120_vm6, %v3332_v54  ;;  %3146 = vst.msk [vmem:[%s5040_s15 + $0x64] sm:$0xf] %vm3120_vm6, %v3333_v42 }
 0x3bf   : > { %v2959_v25 = vpop.permute.xlu1 %2958 }
 0x3c0   : > { %v3007_v11 = vsel %vm2125_vm0, %v4893_v9, %v2959_v25  ;;  %v2957_v55 = vpop.permute.xlu0 %2956 }
 0x3c1   : > { %v3338_v0 = vcombine.low %v3007_v11, %v3007_v11  ;;  %v3339_v28 = vcombine.high %v3007_v11, %v3007_v11  ;;  %v3004_v4 = vsel %vm2125_vm0, %v4897_v7, %v2957_v55 }
 0x3c2   : > { %v3336_v33 = vcombine.low %v3004_v4, %v3004_v4  ;;  %v3337_v15 = vcombine.high %v3004_v4, %v3004_v4 }
 0x3c3   : > { %3151 = vst.msk [vmem:[%s5040_s15 + $0x78] sm:$0xf] %vm3120_vm6, %v3338_v0  ;;  %3152 = vst.msk [vmem:[%s5040_s15 + $0x7c] sm:$0xf] %vm3120_vm6, %v3339_v28 }
 0x3c4   : > { %3149 = vst.msk [vmem:[%s5040_s15 + $0x70] sm:$0xf] %vm3120_vm6, %v3336_v33  ;;  %3150 = vst.msk [vmem:[%s5040_s15 + $0x74] sm:$0xf] %vm3120_vm6, %v3337_v15 }
 0x3c5   : > { %3601 = shalt.err (!%p3598_p3)
}
 0x3c6   : > { %s3602_s8 = scalar_lea.hbm %s5163_s20, 2048  ;;  %s3606_s15 = scalar_lea.hbm %s5227_s7, 4096 }
 0x3c7   : > { %p3603_p4 = scmp.ne.s32.totalorder %s5163_s20, %s3602_s8  ;;  %p3607_p9 = scmp.lt.u32.totalorder %s5163_s20, %s5227_s7 }
 0x3c8   : > { %p3608_p10 = scmp.lt.u32.totalorder %s3606_s15, %s3602_s8  ;;  %p3610_p12 = scmp.lt.u32.totalorder %s3602_s8, %s5163_s20 }
 0x3c9   : > { %p3604_p7 = pnand %p3603_p4, %p3741_p5 }
 0x3ca   : > { %p3609_p11 = por %p3608_p10, %p3607_p9 }
 0x3cb   : > { %p3605_p8 = pneg %p3604_p7 }
 0x3cc   : > { %p3611_p13 = por %p3610_p12, %p3609_p11 }
 0x3ce   : > { %p3612_p0 = pnand %p3611_p13, %p3605_p8 }
 0x3d0   : > { %3615 = shalt.err (!%p3612_p0)
}
 0x3d1   : > { %s3662_s19 = smov 4  }
 0x3d2   : > { %3518 = dma.vmem_to_hbm [thread:$0]  (%p3741_p5), %s5165_s16, 2048, %s5163_s20, %s5177_s28, %s3660_s17, %s3660_s17, %s3662_s19  }
 0x3d3 PF: > { %p3524_p1 = scmp.ge.s32.totalorder %s3650_s27, 2  ;;  %s3182_s21 = sand.u32 1, %s3638_s24  }
 0x3d4   : > { %s3183_s23 = scalar_lea.sflag [#allocation4], %s3182_s21 }
 0x3d5   : > { %p3521_p2 = pnand %p3524_p1, %p3745_p6 }
 0x3d7   : > { %3633 = dma.done.wait (!%p3521_p2), %s3183_s23, 2048  }
 0x3d8   : > { %3635 = vsyncadd (!%p3521_p2), %s3183_s23, 4294965248  ;;  %p17_p3 = scmp.ge.s32.totalorder %s3728_s30, 4   ;;  %s5427_s24 = smov %s3642_s25 }
 0x3d9   : > { %s5428_s25 = smov %s3646_s26  ;;  %s5429_s26 = smov %s3739_s10 }
 0x3da   : > { %s5430_s27 = smov %s3728_s30  ;;  %19 = sbr.rel (!%p17_p3) target bundleno = 3 (0x3), region = 83 }
 0x3e1   :  { %3188 = vsyncpa [#allocation4], 1 }
 0x3e2   :  { %3190 = vsyncpa [#allocation4 + $0x1], 1 }

</bundles_post_ra>
